<compile_context>
chip_gen: v5e
topology: v5e:2x2
jax: 0.10.0
libtpu: 0.0.40
codegen_flags: <defaults>
</compile_context>

<pallas_src>
import math

import jax
import jax.numpy as jnp
from jax.experimental import pallas as pl
from jax.experimental.pallas import tpu as pltpu

INPUT_SIZE = 16
HIDDEN = 64
NUM_HEADS = 8
HEAD_DIM = HIDDEN // NUM_HEADS
BATCH = 4
SEQ = 8


# ------------------------------ Pallas kernel --------------------------------

def fused_kernel(x_ref, wih_ref, whh_ref, bg_ref,
                 wqkv_ref, bqkv_ref, ind_ref, wfold_ref, bfold_ref,
                 out_ref, lstm_ref):
    """x_ref: (T*B, Din) time-major -> out_ref: (B, 1). Everything in VMEM."""
    TB = x_ref.shape[0]
    H = whh_ref.shape[0]
    B = out_ref.shape[0]
    T = TB // B

    # ---- LSTM: input projection hoisted out of the recurrence ---------------
    wih = wih_ref[...]                                    # (Din, 4H), hoisted
    whh = whh_ref[...]                                    # (H,  4H), hoisted
    xw = jnp.dot(x_ref[...], wih,
                 preferred_element_type=jnp.float32) + bg_ref[...]       # (T*B, 4H)

    h = jnp.zeros((B, H), jnp.float32)
    c = jnp.zeros((B, H), jnp.float32)
    for t in range(T):                      # T static -> fully unrolled recurrence
        gates = xw[t * B:(t + 1) * B, :] + jnp.dot(
            h, whh, preferred_element_type=jnp.float32)                  # (B, 4H)
        # Gate columns were reordered wrapper-side to (i, f, o, g):
        sig = jax.nn.sigmoid(gates[:, :3 * H])            # one EUP call: i | f | o
        g_g = jnp.tanh(gates[:, 3 * H:])                  # one EUP call: g
        i_g = sig[:, 0:H]
        f_g = sig[:, H:2 * H]
        o_g = sig[:, 2 * H:3 * H]
        c = f_g * c + i_g * g_g
        h = o_g * jnp.tanh(c)
        lstm_ref[t * B:(t + 1) * B, :] = h                # static-offset store

    lstm_tm = lstm_ref[...]                               # (T*B, H) time-major

    # ---- MultiheadAttention (query = last step), fused QKV -------------------
    qkv = jnp.dot(lstm_tm, wqkv_ref[...],
                  preferred_element_type=jnp.float32) + bqkv_ref[...]    # (T*B, 3H)
    q = qkv[(T - 1) * B:T * B, 0:H]                       # (B, H) last-step query
    k3 = qkv[:, H:2 * H].reshape(T, B, H)
    v3 = qkv[:, 2 * H:3 * H].reshape(T, B, H)

    # Per-head score = sum over head lanes of k*q; one MXU push against a scaled
    # (H, H) block-diagonal indicator gives scores already replicated across
    # each head's lanes (scale folded into ind_ref).
    kq = (k3 * q[None, :, :]).reshape(TB, H)              # stride-0 broadcast of q
    s = jnp.dot(kq, ind_ref[...],
                preferred_element_type=jnp.float32).reshape(T, B, H)

    # Softmax over time, per lane (each lane carries its head's score).
    m = jnp.max(s, axis=0, keepdims=True)
    e = jnp.exp(s - m)
    p = e / jnp.sum(e, axis=0, keepdims=True)             # (T, B, H)

    ctx = jnp.sum(p * v3, axis=0)                         # (B, H)

    # ---- folded out_proj + fc, then abs --------------------------------------
    out = jnp.dot(ctx, wfold_ref[...],
                  preferred_element_type=jnp.float32) + bfold_ref[...]   # (B, 1)
    out_ref[...] = jnp.abs(out)


# ------------------------------- JAX wrapper ----------------------------------

def _vmem_spec():
    return pl.BlockSpec(memory_space=pltpu.MemorySpace.VMEM)


@jax.jit
def t1_lstm_model_simple(x, params):
    B, T, Din = x.shape
    H = HIDDEN
    scale = 1.0 / math.sqrt(HEAD_DIM)

    # PyTorch gate row order is (i, f, g, o); reorder to (i, f, o, g) so the
    # kernel applies one sigmoid over the first 3H columns and one tanh over
    # the last H columns.
    def reorder(w):
        return jnp.concatenate([w[:H], w[H:2 * H], w[3 * H:], w[2 * H:3 * H]],
                               axis=0)

    w_ih_t = reorder(params["w_ih"]).T                               # (Din, 4H)
    w_hh_t = reorder(params["w_hh"]).T                               # (H,  4H)
    b_gates = reorder(params["b_ih"] + params["b_hh"])[None, :]      # (1,  4H)

    # Fused QKV projection: in_proj_w is (3H, H) with rows [Wq; Wk; Wv], so its
    # transpose is exactly [Wq.T | Wk.T | Wv.T] -> (H, 3H).
    w_qkv = params["in_proj_w"].T                                    # (H, 3H)
    b_qkv = params["in_proj_b"][None, :]                             # (1, 3H)

    # Scaled block-diagonal indicator: per-head reduce on the MXU with the
    # 1/sqrt(head_dim) folded in.
    head_id = jnp.arange(H) // HEAD_DIM
    ind_hh = (head_id[:, None] == head_id[None, :]).astype(jnp.float32) * scale  # (H, H)

    # Fold attention out_proj and the final fc into one (H, 1) projection.
    w_fold = params["out_proj_w"].T @ params["fc_w"].T               # (H, 1)
    b_fold = (params["out_proj_b"] @ params["fc_w"].T
              + params["fc_b"])[None, :]                             # (1, 1)

    # Time-major flatten done wrapper-side (pure layout plumbing).
    x_tm = jnp.transpose(x, (1, 0, 2)).reshape(T * B, Din)           # (T*B, Din)

    args = (x_tm, w_ih_t, w_hh_t, b_gates, w_qkv, b_qkv, ind_hh, w_fold, b_fold)
    out = pl.pallas_call(
        fused_kernel,
        out_shape=jax.ShapeDtypeStruct((B, 1), jnp.float32),
        in_specs=[_vmem_spec() for _ in args],
        out_specs=_vmem_spec(),
        scratch_shapes=[pltpu.VMEM((T * B, H), jnp.float32)],
    )(*args)
    return out[:, 0]


# --------------------------- reference (pure JAX) -----------------------------

def reference(x, p):
    B, T, _ = x.shape
    H = HIDDEN
    h = jnp.zeros((B, H), jnp.float32)
    c = jnp.zeros((B, H), jnp.float32)
    outs = []
    for t in range(T):
        gates = x[:, t, :] @ p["w_ih"].T + h @ p["w_hh"].T + p["b_ih"] + p["b_hh"]
        i = jax.nn.sigmoid(gates[:, :H])
        f = jax.nn.sigmoid(gates[:, H:2 * H])
        g = jnp.tanh(gates[:, 2 * H:3 * H])
        o = jax.nn.sigmoid(gates[:, 3 * H:])
        c = f * c + i * g
        h = o * jnp.tanh(c)
        outs.append(h)
    lstm_out = jnp.stack(outs, axis=1)                                  # (B, T, H)
    q = lstm_out[:, -1:, :]
    wq, wk, wv = p["in_proj_w"][:H], p["in_proj_w"][H:2 * H], p["in_proj_w"][2 * H:]
    bq, bk, bv = p["in_proj_b"][:H], p["in_proj_b"][H:2 * H], p["in_proj_b"][2 * H:]
    Q = q @ wq.T + bq
    K = lstm_out @ wk.T + bk
    V = lstm_out @ wv.T + bv
    Qh = jnp.transpose(Q.reshape(B, 1, NUM_HEADS, HEAD_DIM), (0, 2, 1, 3))
    Kh = jnp.transpose(K.reshape(B, T, NUM_HEADS, HEAD_DIM), (0, 2, 1, 3))
    Vh = jnp.transpose(V.reshape(B, T, NUM_HEADS, HEAD_DIM), (0, 2, 1, 3))
    s = jnp.einsum("bhqd,bhkd->bhqk", Qh, Kh) / math.sqrt(HEAD_DIM)
    pr = jax.nn.softmax(s, axis=-1)
    ctx = jnp.transpose(jnp.einsum("bhqk,bhkd->bhqd", pr, Vh), (0, 2, 1, 3)).reshape(B, 1, H)
    attn = ctx @ p["out_proj_w"].T + p["out_proj_b"]
    out = (attn[:, 0, :] @ p["fc_w"].T + p["fc_b"])[:, 0]
    return jnp.abs(out)


# ---------------------------------- params ------------------------------------

def init_params(key):
    ks = jax.random.split(key, 8)
    k = 1.0 / math.sqrt(HIDDEN)
    u = lambda kk, shape: jax.random.uniform(kk, shape, jnp.float32, -k, k)
    return {
        "w_ih": u(ks[0], (4 * HIDDEN, INPUT_SIZE)),
        "w_hh": u(ks[1], (4 * HIDDEN, HIDDEN)),
        "b_ih": u(ks[2], (4 * HIDDEN,)),
        "b_hh": u(ks[3], (4 * HIDDEN,)),
        "in_proj_w": u(ks[4], (3 * HIDDEN, HIDDEN)),
        "in_proj_b": jnp.zeros((3 * HIDDEN,), jnp.float32),
        "out_proj_w": u(ks[5], (HIDDEN, HIDDEN)),
        "out_proj_b": jnp.zeros((HIDDEN,), jnp.float32),
        "fc_w": u(ks[6], (1, HIDDEN)),
        "fc_b": u(ks[7], (1,)),
    }


if __name__ == "__main__":
    import numpy as np

    key = jax.random.PRNGKey(0)
    kx, kp = jax.random.split(key)
    x = jax.random.normal(kx, (BATCH, SEQ, INPUT_SIZE), jnp.float32)
    params = init_params(kp)

    out = jax.block_until_ready(t1_lstm_model_simple(x, params))
    assert out.shape == (BATCH,)

    ref = reference(x, params)
    np.testing.assert_allclose(np.asarray(out), np.asarray(ref), rtol=1e-4, atol=1e-4)
    print("KERNEL_OK")
</pallas_src>

<mosaic_0001>
module attributes {stable_mosaic.version = 11 : i64} {
  func.func @fused_kernel(%arg0: memref<32x16xf32, #tpu.memory_space<vmem>>, %arg1: memref<16x256xf32, #tpu.memory_space<vmem>>, %arg2: memref<64x256xf32, #tpu.memory_space<vmem>>, %arg3: memref<1x256xf32, #tpu.memory_space<vmem>>, %arg4: memref<64x192xf32, #tpu.memory_space<vmem>>, %arg5: memref<1x192xf32, #tpu.memory_space<vmem>>, %arg6: memref<64x64xf32, #tpu.memory_space<vmem>>, %arg7: memref<64x1xf32, #tpu.memory_space<vmem>>, %arg8: memref<1x1xf32, #tpu.memory_space<vmem>>, %arg9: memref<4x1xf32, #tpu.memory_space<vmem>>, %arg10: memref<32x64xf32, #tpu.memory_space<vmem>>) attributes {dimension_semantics = [], scalar_prefetch = 0 : i64, scratch_operands = 1 : i64, tpu.core_type = #tpu.core_type<tc>} {
    %c0 = arith.constant 0 : index
    %c0_0 = arith.constant 0 : index
    %0 = vector.load %arg1[%c0, %c0_0] : memref<16x256xf32, #tpu.memory_space<vmem>>, vector<16x256xf32>
    %c0_1 = arith.constant 0 : index
    %c0_2 = arith.constant 0 : index
    %1 = vector.load %arg2[%c0_1, %c0_2] : memref<64x256xf32, #tpu.memory_space<vmem>>, vector<64x256xf32>
    %c0_3 = arith.constant 0 : index
    %c0_4 = arith.constant 0 : index
    %2 = vector.load %arg0[%c0_3, %c0_4] : memref<32x16xf32, #tpu.memory_space<vmem>>, vector<32x16xf32>
    %cst = arith.constant dense<0.000000e+00> : vector<32x256xf32>
    %3 = tpu.matmul %2, %0, %cst {dimension_numbers = #tpu.dot_dimension_numbers<[1], [0], [0], [1], [0, 0, 1, 1], [], []>} : vector<32x16xf32>, vector<16x256xf32>, vector<32x256xf32> -> vector<32x256xf32>
    %c0_5 = arith.constant 0 : index
    %c0_6 = arith.constant 0 : index
    %4 = vector.load %arg3[%c0_5, %c0_6] : memref<1x256xf32, #tpu.memory_space<vmem>>, vector<1x256xf32>
    %5 = vector.broadcast %4 : vector<1x256xf32> to vector<32x256xf32>
    %6 = arith.addf %3, %5 : vector<32x256xf32>
    %cst_7 = arith.constant 0.000000e+00 : f32
    %7 = vector.broadcast %cst_7 : f32 to vector<4x64xf32>
    %cst_8 = arith.constant 0.000000e+00 : f32
    %8 = vector.broadcast %cst_8 : f32 to vector<4x64xf32>
    %9 = vector.extract_strided_slice %6 {offsets = [0, 0], sizes = [4, 256], strides = [1, 1]} : vector<32x256xf32> to vector<4x256xf32>
    %cst_9 = arith.constant dense<0.000000e+00> : vector<4x256xf32>
    %10 = tpu.matmul %7, %1, %cst_9 {dimension_numbers = #tpu.dot_dimension_numbers<[1], [0], [0], [1], [0, 0, 1, 1], [], []>} : vector<4x64xf32>, vector<64x256xf32>, vector<4x256xf32> -> vector<4x256xf32>
    %11 = arith.addf %9, %10 : vector<4x256xf32>
    %12 = vector.extract_strided_slice %11 {offsets = [0, 0], sizes = [4, 192], strides = [1, 1]} : vector<4x256xf32> to vector<4x192xf32>
    %13 = arith.negf %12 : vector<4x192xf32>
    %14 = math.exp %13 : vector<4x192xf32>
    %cst_10 = arith.constant 1.000000e+00 : f32
    %15 = vector.broadcast %cst_10 : f32 to vector<4x192xf32>
    %16 = arith.addf %15, %14 : vector<4x192xf32>
    %17 = arith.divf %15, %16 : vector<4x192xf32>
    %18 = vector.extract_strided_slice %11 {offsets = [0, 192], sizes = [4, 64], strides = [1, 1]} : vector<4x256xf32> to vector<4x64xf32>
    %19 = math.tanh %18 : vector<4x64xf32>
    %20 = vector.extract_strided_slice %17 {offsets = [0, 0], sizes = [4, 64], strides = [1, 1]} : vector<4x192xf32> to vector<4x64xf32>
    %21 = vector.extract_strided_slice %17 {offsets = [0, 64], sizes = [4, 64], strides = [1, 1]} : vector<4x192xf32> to vector<4x64xf32>
    %22 = vector.extract_strided_slice %17 {offsets = [0, 128], sizes = [4, 64], strides = [1, 1]} : vector<4x192xf32> to vector<4x64xf32>
    %23 = arith.mulf %21, %8 : vector<4x64xf32>
    %24 = arith.mulf %20, %19 : vector<4x64xf32>
    %25 = arith.addf %23, %24 : vector<4x64xf32>
    %26 = math.tanh %25 : vector<4x64xf32>
    %27 = arith.mulf %22, %26 : vector<4x64xf32>
    %c0_11 = arith.constant 0 : index
    %c0_12 = arith.constant 0 : index
    %28 = vector.load %arg10[%c0_11, %c0_12] : memref<32x64xf32, #tpu.memory_space<vmem>>, vector<4x64xf32>
    tpu.vector_store %arg10[%c0_11, %c0_12], %27 {strides = array<i32>} : memref<32x64xf32, #tpu.memory_space<vmem>>, vector<4x64xf32>,
    %29 = vector.extract_strided_slice %6 {offsets = [4, 0], sizes = [4, 256], strides = [1, 1]} : vector<32x256xf32> to vector<4x256xf32>
    %cst_13 = arith.constant dense<0.000000e+00> : vector<4x256xf32>
    %30 = tpu.matmul %27, %1, %cst_13 {dimension_numbers = #tpu.dot_dimension_numbers<[1], [0], [0], [1], [0, 0, 1, 1], [], []>} : vector<4x64xf32>, vector<64x256xf32>, vector<4x256xf32> -> vector<4x256xf32>
    %31 = arith.addf %29, %30 : vector<4x256xf32>
    %32 = vector.extract_strided_slice %31 {offsets = [0, 0], sizes = [4, 192], strides = [1, 1]} : vector<4x256xf32> to vector<4x192xf32>
    %33 = arith.negf %32 : vector<4x192xf32>
    %34 = math.exp %33 : vector<4x192xf32>
    %cst_14 = arith.constant 1.000000e+00 : f32
    %35 = vector.broadcast %cst_14 : f32 to vector<4x192xf32>
    %36 = arith.addf %35, %34 : vector<4x192xf32>
    %37 = arith.divf %35, %36 : vector<4x192xf32>
    %38 = vector.extract_strided_slice %31 {offsets = [0, 192], sizes = [4, 64], strides = [1, 1]} : vector<4x256xf32> to vector<4x64xf32>
    %39 = math.tanh %38 : vector<4x64xf32>
    %40 = vector.extract_strided_slice %37 {offsets = [0, 0], sizes = [4, 64], strides = [1, 1]} : vector<4x192xf32> to vector<4x64xf32>
    %41 = vector.extract_strided_slice %37 {offsets = [0, 64], sizes = [4, 64], strides = [1, 1]} : vector<4x192xf32> to vector<4x64xf32>
    %42 = vector.extract_strided_slice %37 {offsets = [0, 128], sizes = [4, 64], strides = [1, 1]} : vector<4x192xf32> to vector<4x64xf32>
    %43 = arith.mulf %41, %25 : vector<4x64xf32>
    %44 = arith.mulf %40, %39 : vector<4x64xf32>
    %45 = arith.addf %43, %44 : vector<4x64xf32>
    %46 = math.tanh %45 : vector<4x64xf32>
    %47 = arith.mulf %42, %46 : vector<4x64xf32>
    %c4 = arith.constant 4 : index
    %c0_15 = arith.constant 0 : index
    %48 = vector.load %arg10[%c4, %c0_15] : memref<32x64xf32, #tpu.memory_space<vmem>>, vector<4x64xf32>
    tpu.vector_store %arg10[%c4, %c0_15], %47 {strides = array<i32>} : memref<32x64xf32, #tpu.memory_space<vmem>>, vector<4x64xf32>,
    %49 = vector.extract_strided_slice %6 {offsets = [8, 0], sizes = [4, 256], strides = [1, 1]} : vector<32x256xf32> to vector<4x256xf32>
    %cst_16 = arith.constant dense<0.000000e+00> : vector<4x256xf32>
    %50 = tpu.matmul %47, %1, %cst_16 {dimension_numbers = #tpu.dot_dimension_numbers<[1], [0], [0], [1], [0, 0, 1, 1], [], []>} : vector<4x64xf32>, vector<64x256xf32>, vector<4x256xf32> -> vector<4x256xf32>
    %51 = arith.addf %49, %50 : vector<4x256xf32>
    %52 = vector.extract_strided_slice %51 {offsets = [0, 0], sizes = [4, 192], strides = [1, 1]} : vector<4x256xf32> to vector<4x192xf32>
    %53 = arith.negf %52 : vector<4x192xf32>
    %54 = math.exp %53 : vector<4x192xf32>
    %cst_17 = arith.constant 1.000000e+00 : f32
    %55 = vector.broadcast %cst_17 : f32 to vector<4x192xf32>
    %56 = arith.addf %55, %54 : vector<4x192xf32>
    %57 = arith.divf %55, %56 : vector<4x192xf32>
    %58 = vector.extract_strided_slice %51 {offsets = [0, 192], sizes = [4, 64], strides = [1, 1]} : vector<4x256xf32> to vector<4x64xf32>
    %59 = math.tanh %58 : vector<4x64xf32>
    %60 = vector.extract_strided_slice %57 {offsets = [0, 0], sizes = [4, 64], strides = [1, 1]} : vector<4x192xf32> to vector<4x64xf32>
    %61 = vector.extract_strided_slice %57 {offsets = [0, 64], sizes = [4, 64], strides = [1, 1]} : vector<4x192xf32> to vector<4x64xf32>
    %62 = vector.extract_strided_slice %57 {offsets = [0, 128], sizes = [4, 64], strides = [1, 1]} : vector<4x192xf32> to vector<4x64xf32>
    %63 = arith.mulf %61, %45 : vector<4x64xf32>
    %64 = arith.mulf %60, %59 : vector<4x64xf32>
    %65 = arith.addf %63, %64 : vector<4x64xf32>
    %66 = math.tanh %65 : vector<4x64xf32>
    %67 = arith.mulf %62, %66 : vector<4x64xf32>
    %c8 = arith.constant 8 : index
    %c0_18 = arith.constant 0 : index
    %68 = vector.load %arg10[%c8, %c0_18] : memref<32x64xf32, #tpu.memory_space<vmem>>, vector<4x64xf32>
    tpu.vector_store %arg10[%c8, %c0_18], %67 {strides = array<i32>} : memref<32x64xf32, #tpu.memory_space<vmem>>, vector<4x64xf32>,
    %69 = vector.extract_strided_slice %6 {offsets = [12, 0], sizes = [4, 256], strides = [1, 1]} : vector<32x256xf32> to vector<4x256xf32>
    %cst_19 = arith.constant dense<0.000000e+00> : vector<4x256xf32>
    %70 = tpu.matmul %67, %1, %cst_19 {dimension_numbers = #tpu.dot_dimension_numbers<[1], [0], [0], [1], [0, 0, 1, 1], [], []>} : vector<4x64xf32>, vector<64x256xf32>, vector<4x256xf32> -> vector<4x256xf32>
    %71 = arith.addf %69, %70 : vector<4x256xf32>
    %72 = vector.extract_strided_slice %71 {offsets = [0, 0], sizes = [4, 192], strides = [1, 1]} : vector<4x256xf32> to vector<4x192xf32>
    %73 = arith.negf %72 : vector<4x192xf32>
    %74 = math.exp %73 : vector<4x192xf32>
    %cst_20 = arith.constant 1.000000e+00 : f32
    %75 = vector.broadcast %cst_20 : f32 to vector<4x192xf32>
    %76 = arith.addf %75, %74 : vector<4x192xf32>
    %77 = arith.divf %75, %76 : vector<4x192xf32>
    %78 = vector.extract_strided_slice %71 {offsets = [0, 192], sizes = [4, 64], strides = [1, 1]} : vector<4x256xf32> to vector<4x64xf32>
    %79 = math.tanh %78 : vector<4x64xf32>
    %80 = vector.extract_strided_slice %77 {offsets = [0, 0], sizes = [4, 64], strides = [1, 1]} : vector<4x192xf32> to vector<4x64xf32>
    %81 = vector.extract_strided_slice %77 {offsets = [0, 64], sizes = [4, 64], strides = [1, 1]} : vector<4x192xf32> to vector<4x64xf32>
    %82 = vector.extract_strided_slice %77 {offsets = [0, 128], sizes = [4, 64], strides = [1, 1]} : vector<4x192xf32> to vector<4x64xf32>
    %83 = arith.mulf %81, %65 : vector<4x64xf32>
    %84 = arith.mulf %80, %79 : vector<4x64xf32>
    %85 = arith.addf %83, %84 : vector<4x64xf32>
    %86 = math.tanh %85 : vector<4x64xf32>
    %87 = arith.mulf %82, %86 : vector<4x64xf32>
    %c12 = arith.constant 12 : index
    %c0_21 = arith.constant 0 : index
    %88 = vector.load %arg10[%c12, %c0_21] : memref<32x64xf32, #tpu.memory_space<vmem>>, vector<4x64xf32>
    tpu.vector_store %arg10[%c12, %c0_21], %87 {strides = array<i32>} : memref<32x64xf32, #tpu.memory_space<vmem>>, vector<4x64xf32>,
    %89 = vector.extract_strided_slice %6 {offsets = [16, 0], sizes = [4, 256], strides = [1, 1]} : vector<32x256xf32> to vector<4x256xf32>
    %cst_22 = arith.constant dense<0.000000e+00> : vector<4x256xf32>
    %90 = tpu.matmul %87, %1, %cst_22 {dimension_numbers = #tpu.dot_dimension_numbers<[1], [0], [0], [1], [0, 0, 1, 1], [], []>} : vector<4x64xf32>, vector<64x256xf32>, vector<4x256xf32> -> vector<4x256xf32>
    %91 = arith.addf %89, %90 : vector<4x256xf32>
    %92 = vector.extract_strided_slice %91 {offsets = [0, 0], sizes = [4, 192], strides = [1, 1]} : vector<4x256xf32> to vector<4x192xf32>
    %93 = arith.negf %92 : vector<4x192xf32>
    %94 = math.exp %93 : vector<4x192xf32>
    %cst_23 = arith.constant 1.000000e+00 : f32
    %95 = vector.broadcast %cst_23 : f32 to vector<4x192xf32>
    %96 = arith.addf %95, %94 : vector<4x192xf32>
    %97 = arith.divf %95, %96 : vector<4x192xf32>
    %98 = vector.extract_strided_slice %91 {offsets = [0, 192], sizes = [4, 64], strides = [1, 1]} : vector<4x256xf32> to vector<4x64xf32>
    %99 = math.tanh %98 : vector<4x64xf32>
    %100 = vector.extract_strided_slice %97 {offsets = [0, 0], sizes = [4, 64], strides = [1, 1]} : vector<4x192xf32> to vector<4x64xf32>
    %101 = vector.extract_strided_slice %97 {offsets = [0, 64], sizes = [4, 64], strides = [1, 1]} : vector<4x192xf32> to vector<4x64xf32>
    %102 = vector.extract_strided_slice %97 {offsets = [0, 128], sizes = [4, 64], strides = [1, 1]} : vector<4x192xf32> to vector<4x64xf32>
    %103 = arith.mulf %101, %85 : vector<4x64xf32>
    %104 = arith.mulf %100, %99 : vector<4x64xf32>
    %105 = arith.addf %103, %104 : vector<4x64xf32>
    %106 = math.tanh %105 : vector<4x64xf32>
    %107 = arith.mulf %102, %106 : vector<4x64xf32>
    %c16 = arith.constant 16 : index
    %c0_24 = arith.constant 0 : index
    %108 = vector.load %arg10[%c16, %c0_24] : memref<32x64xf32, #tpu.memory_space<vmem>>, vector<4x64xf32>
    tpu.vector_store %arg10[%c16, %c0_24], %107 {strides = array<i32>} : memref<32x64xf32, #tpu.memory_space<vmem>>, vector<4x64xf32>,
    %109 = vector.extract_strided_slice %6 {offsets = [20, 0], sizes = [4, 256], strides = [1, 1]} : vector<32x256xf32> to vector<4x256xf32>
    %cst_25 = arith.constant dense<0.000000e+00> : vector<4x256xf32>
    %110 = tpu.matmul %107, %1, %cst_25 {dimension_numbers = #tpu.dot_dimension_numbers<[1], [0], [0], [1], [0, 0, 1, 1], [], []>} : vector<4x64xf32>, vector<64x256xf32>, vector<4x256xf32> -> vector<4x256xf32>
    %111 = arith.addf %109, %110 : vector<4x256xf32>
    %112 = vector.extract_strided_slice %111 {offsets = [0, 0], sizes = [4, 192], strides = [1, 1]} : vector<4x256xf32> to vector<4x192xf32>
    %113 = arith.negf %112 : vector<4x192xf32>
    %114 = math.exp %113 : vector<4x192xf32>
    %cst_26 = arith.constant 1.000000e+00 : f32
    %115 = vector.broadcast %cst_26 : f32 to vector<4x192xf32>
    %116 = arith.addf %115, %114 : vector<4x192xf32>
    %117 = arith.divf %115, %116 : vector<4x192xf32>
    %118 = vector.extract_strided_slice %111 {offsets = [0, 192], sizes = [4, 64], strides = [1, 1]} : vector<4x256xf32> to vector<4x64xf32>
    %119 = math.tanh %118 : vector<4x64xf32>
    %120 = vector.extract_strided_slice %117 {offsets = [0, 0], sizes = [4, 64], strides = [1, 1]} : vector<4x192xf32> to vector<4x64xf32>
    %121 = vector.extract_strided_slice %117 {offsets = [0, 64], sizes = [4, 64], strides = [1, 1]} : vector<4x192xf32> to vector<4x64xf32>
    %122 = vector.extract_strided_slice %117 {offsets = [0, 128], sizes = [4, 64], strides = [1, 1]} : vector<4x192xf32> to vector<4x64xf32>
    %123 = arith.mulf %121, %105 : vector<4x64xf32>
    %124 = arith.mulf %120, %119 : vector<4x64xf32>
    %125 = arith.addf %123, %124 : vector<4x64xf32>
    %126 = math.tanh %125 : vector<4x64xf32>
    %127 = arith.mulf %122, %126 : vector<4x64xf32>
    %c20 = arith.constant 20 : index
    %c0_27 = arith.constant 0 : index
    %128 = vector.load %arg10[%c20, %c0_27] : memref<32x64xf32, #tpu.memory_space<vmem>>, vector<4x64xf32>
    tpu.vector_store %arg10[%c20, %c0_27], %127 {strides = array<i32>} : memref<32x64xf32, #tpu.memory_space<vmem>>, vector<4x64xf32>,
    %129 = vector.extract_strided_slice %6 {offsets = [24, 0], sizes = [4, 256], strides = [1, 1]} : vector<32x256xf32> to vector<4x256xf32>
    %cst_28 = arith.constant dense<0.000000e+00> : vector<4x256xf32>
    %130 = tpu.matmul %127, %1, %cst_28 {dimension_numbers = #tpu.dot_dimension_numbers<[1], [0], [0], [1], [0, 0, 1, 1], [], []>} : vector<4x64xf32>, vector<64x256xf32>, vector<4x256xf32> -> vector<4x256xf32>
    %131 = arith.addf %129, %130 : vector<4x256xf32>
    %132 = vector.extract_strided_slice %131 {offsets = [0, 0], sizes = [4, 192], strides = [1, 1]} : vector<4x256xf32> to vector<4x192xf32>
    %133 = arith.negf %132 : vector<4x192xf32>
    %134 = math.exp %133 : vector<4x192xf32>
    %cst_29 = arith.constant 1.000000e+00 : f32
    %135 = vector.broadcast %cst_29 : f32 to vector<4x192xf32>
    %136 = arith.addf %135, %134 : vector<4x192xf32>
    %137 = arith.divf %135, %136 : vector<4x192xf32>
    %138 = vector.extract_strided_slice %131 {offsets = [0, 192], sizes = [4, 64], strides = [1, 1]} : vector<4x256xf32> to vector<4x64xf32>
    %139 = math.tanh %138 : vector<4x64xf32>
    %140 = vector.extract_strided_slice %137 {offsets = [0, 0], sizes = [4, 64], strides = [1, 1]} : vector<4x192xf32> to vector<4x64xf32>
    %141 = vector.extract_strided_slice %137 {offsets = [0, 64], sizes = [4, 64], strides = [1, 1]} : vector<4x192xf32> to vector<4x64xf32>
    %142 = vector.extract_strided_slice %137 {offsets = [0, 128], sizes = [4, 64], strides = [1, 1]} : vector<4x192xf32> to vector<4x64xf32>
    %143 = arith.mulf %141, %125 : vector<4x64xf32>
    %144 = arith.mulf %140, %139 : vector<4x64xf32>
    %145 = arith.addf %143, %144 : vector<4x64xf32>
    %146 = math.tanh %145 : vector<4x64xf32>
    %147 = arith.mulf %142, %146 : vector<4x64xf32>
    %c24 = arith.constant 24 : index
    %c0_30 = arith.constant 0 : index
    %148 = vector.load %arg10[%c24, %c0_30] : memref<32x64xf32, #tpu.memory_space<vmem>>, vector<4x64xf32>
    tpu.vector_store %arg10[%c24, %c0_30], %147 {strides = array<i32>} : memref<32x64xf32, #tpu.memory_space<vmem>>, vector<4x64xf32>,
    %149 = vector.extract_strided_slice %6 {offsets = [28, 0], sizes = [4, 256], strides = [1, 1]} : vector<32x256xf32> to vector<4x256xf32>
    %cst_31 = arith.constant dense<0.000000e+00> : vector<4x256xf32>
    %150 = tpu.matmul %147, %1, %cst_31 {dimension_numbers = #tpu.dot_dimension_numbers<[1], [0], [0], [1], [0, 0, 1, 1], [], []>} : vector<4x64xf32>, vector<64x256xf32>, vector<4x256xf32> -> vector<4x256xf32>
    %151 = arith.addf %149, %150 : vector<4x256xf32>
    %152 = vector.extract_strided_slice %151 {offsets = [0, 0], sizes = [4, 192], strides = [1, 1]} : vector<4x256xf32> to vector<4x192xf32>
    %153 = arith.negf %152 : vector<4x192xf32>
    %154 = math.exp %153 : vector<4x192xf32>
    %cst_32 = arith.constant 1.000000e+00 : f32
    %155 = vector.broadcast %cst_32 : f32 to vector<4x192xf32>
    %156 = arith.addf %155, %154 : vector<4x192xf32>
    %157 = arith.divf %155, %156 : vector<4x192xf32>
    %158 = vector.extract_strided_slice %151 {offsets = [0, 192], sizes = [4, 64], strides = [1, 1]} : vector<4x256xf32> to vector<4x64xf32>
    %159 = math.tanh %158 : vector<4x64xf32>
    %160 = vector.extract_strided_slice %157 {offsets = [0, 0], sizes = [4, 64], strides = [1, 1]} : vector<4x192xf32> to vector<4x64xf32>
    %161 = vector.extract_strided_slice %157 {offsets = [0, 64], sizes = [4, 64], strides = [1, 1]} : vector<4x192xf32> to vector<4x64xf32>
    %162 = vector.extract_strided_slice %157 {offsets = [0, 128], sizes = [4, 64], strides = [1, 1]} : vector<4x192xf32> to vector<4x64xf32>
    %163 = arith.mulf %161, %145 : vector<4x64xf32>
    %164 = arith.mulf %160, %159 : vector<4x64xf32>
    %165 = arith.addf %163, %164 : vector<4x64xf32>
    %166 = math.tanh %165 : vector<4x64xf32>
    %167 = arith.mulf %162, %166 : vector<4x64xf32>
    %c28 = arith.constant 28 : index
    %c0_33 = arith.constant 0 : index
    %168 = vector.load %arg10[%c28, %c0_33] : memref<32x64xf32, #tpu.memory_space<vmem>>, vector<4x64xf32>
    tpu.vector_store %arg10[%c28, %c0_33], %167 {strides = array<i32>} : memref<32x64xf32, #tpu.memory_space<vmem>>, vector<4x64xf32>,
    %c0_34 = arith.constant 0 : index
    %c0_35 = arith.constant 0 : index
    %169 = vector.load %arg10[%c0_34, %c0_35] : memref<32x64xf32, #tpu.memory_space<vmem>>, vector<32x64xf32>
    %c0_36 = arith.constant 0 : index
    %c0_37 = arith.constant 0 : index
    %170 = vector.load %arg4[%c0_36, %c0_37] : memref<64x192xf32, #tpu.memory_space<vmem>>, vector<64x192xf32>
    %cst_38 = arith.constant dense<0.000000e+00> : vector<32x192xf32>
    %171 = tpu.matmul %169, %170, %cst_38 {dimension_numbers = #tpu.dot_dimension_numbers<[1], [0], [0], [1], [0, 0, 1, 1], [], []>} : vector<32x64xf32>, vector<64x192xf32>, vector<32x192xf32> -> vector<32x192xf32>
    %c0_39 = arith.constant 0 : index
    %c0_40 = arith.constant 0 : index
    %172 = vector.load %arg5[%c0_39, %c0_40] : memref<1x192xf32, #tpu.memory_space<vmem>>, vector<1x192xf32>
    %173 = vector.broadcast %172 : vector<1x192xf32> to vector<32x192xf32>
    %174 = arith.addf %171, %173 : vector<32x192xf32>
    %175 = vector.extract_strided_slice %174 {offsets = [28, 0], sizes = [4, 64], strides = [1, 1]} : vector<32x192xf32> to vector<4x64xf32>
    %176 = vector.extract_strided_slice %174 {offsets = [0, 64], sizes = [32, 64], strides = [1, 1]} : vector<32x192xf32> to vector<32x64xf32>
    %177 = vector.shape_cast %176 : vector<32x64xf32> to vector<8x4x64xf32>
    %178 = vector.extract_strided_slice %174 {offsets = [0, 128], sizes = [32, 64], strides = [1, 1]} : vector<32x192xf32> to vector<32x64xf32>
    %179 = vector.shape_cast %178 : vector<32x64xf32> to vector<8x4x64xf32>
    %180 = vector.shape_cast %175 : vector<4x64xf32> to vector<1x4x64xf32>
    %181 = vector.broadcast %180 : vector<1x4x64xf32> to vector<8x4x64xf32>
    %182 = arith.mulf %177, %181 : vector<8x4x64xf32>
    %183 = vector.shape_cast %182 : vector<8x4x64xf32> to vector<32x64xf32>
    %c0_41 = arith.constant 0 : index
    %c0_42 = arith.constant 0 : index
    %184 = vector.load %arg6[%c0_41, %c0_42] : memref<64x64xf32, #tpu.memory_space<vmem>>, vector<64x64xf32>
    %cst_43 = arith.constant dense<0.000000e+00> : vector<32x64xf32>
    %185 = tpu.matmul %183, %184, %cst_43 {dimension_numbers = #tpu.dot_dimension_numbers<[1], [0], [0], [1], [0, 0, 1, 1], [], []>} : vector<32x64xf32>, vector<64x64xf32>, vector<32x64xf32> -> vector<32x64xf32>
    %186 = vector.shape_cast %185 : vector<32x64xf32> to vector<8x4x64xf32>
    %cst_44 = arith.constant dense<0xFF800000> : vector<4x64xf32>
    %187 = vector.multi_reduction <maximumf>, %186, %cst_44 [0] : vector<8x4x64xf32> to vector<4x64xf32>
    %188 = vector.shape_cast %187 : vector<4x64xf32> to vector<1x4x64xf32>
    %189 = vector.broadcast %188 : vector<1x4x64xf32> to vector<8x4x64xf32>
    %190 = arith.subf %186, %189 : vector<8x4x64xf32>
    %191 = math.exp %190 : vector<8x4x64xf32>
    %cst_45 = arith.constant dense<0.000000e+00> : vector<4x64xf32>
    %192 = vector.multi_reduction <add>, %191, %cst_45 [0] : vector<8x4x64xf32> to vector<4x64xf32>
    %193 = vector.shape_cast %192 : vector<4x64xf32> to vector<1x4x64xf32>
    %194 = vector.broadcast %193 : vector<1x4x64xf32> to vector<8x4x64xf32>
    %195 = arith.divf %191, %194 : vector<8x4x64xf32>
    %196 = arith.mulf %195, %179 : vector<8x4x64xf32>
    %cst_46 = arith.constant dense<0.000000e+00> : vector<4x64xf32>
    %197 = vector.multi_reduction <add>, %196, %cst_46 [0] : vector<8x4x64xf32> to vector<4x64xf32>
    %c0_47 = arith.constant 0 : index
    %c0_48 = arith.constant 0 : index
    %198 = vector.load %arg7[%c0_47, %c0_48] : memref<64x1xf32, #tpu.memory_space<vmem>>, vector<64x1xf32>
    %cst_49 = arith.constant dense<0.000000e+00> : vector<4x1xf32>
    %199 = tpu.matmul %197, %198, %cst_49 {dimension_numbers = #tpu.dot_dimension_numbers<[1], [0], [0], [1], [0, 0, 1, 1], [], []>} : vector<4x64xf32>, vector<64x1xf32>, vector<4x1xf32> -> vector<4x1xf32>
    %c0_50 = arith.constant 0 : index
    %c0_51 = arith.constant 0 : index
    %200 = vector.load %arg8[%c0_50, %c0_51] : memref<1x1xf32, #tpu.memory_space<vmem>>, vector<1x1xf32>
    %201 = vector.broadcast %200 : vector<1x1xf32> to vector<4x1xf32>
    %202 = arith.addf %199, %201 : vector<4x1xf32>
    %203 = math.absf %202 : vector<4x1xf32>
    %c0_52 = arith.constant 0 : index
    %c0_53 = arith.constant 0 : index
    %204 = vector.load %arg9[%c0_52, %c0_53] : memref<4x1xf32, #tpu.memory_space<vmem>>, vector<4x1xf32>
    tpu.vector_store %arg9[%c0_52, %c0_53], %203 {strides = array<i32>} : memref<4x1xf32, #tpu.memory_space<vmem>>, vector<4x1xf32>,
    return
  }
}

</mosaic_0001>

<bundles_post_ra>
// kernel: t1_lstm_model_simple.1
= control target key start
LH: loop header
LB: loop body
LE: loop exit
PB: predicated region body
PF: predicated region fallthrough
CT: control target
= control target key end

     0   :  { %vm64_vm0 = vcmask 130048   ;;  %v1575_v15 = vmov 0.0   ;;  %s1576_s30 = smov 64   ;;  %vm237_vm9 = vcmask 519168   ;;  %vm135_vm10 = vcmask 523264   ;;  %s2186_s2 = inlined_call_operand.vmem [shape: f32[64,256], index: 2, kind: input, shape index: {}]   ;;  %s2187_s1 = inlined_call_operand.vmem [shape: f32[16,256], index: 1, kind: input, shape index: {}]   ;;  %s2188_s0 = inlined_call_operand.vmem [shape: f32[32,16], index: 0, kind: input, shape index: {}]   ;;  %s2189_s3 = inlined_call_operand.vmem [shape: f32[1,256], index: 3, kind: input, shape index: {}]   ;;  %s2190_s4 = inlined_call_operand.vmem [shape: f32[64,192], index: 4, kind: input, shape index: {}]   ;;  %s2191_s5 = inlined_call_operand.vmem [shape: f32[1,192], index: 5, kind: input, shape index: {}]   ;;  %s2192_s6 = inlined_call_operand.vmem [shape: f32[64,64], index: 6, kind: input, shape index: {}]   ;;  %s2193_s7 = inlined_call_operand.vmem [shape: f32[64,1], index: 7, kind: input, shape index: {}]   ;;  %s2194_s8 = inlined_call_operand.<no memory space> [shape: f32[1,1], index: 8, kind: input, shape index: {}]   ;;  %s2195_s9 = inlined_call_operand.vmem [shape: f32[4,1], index: 9, kind: output, shape index: {}]  }
   0x1   :  { %v1630_v0 = vld [vmem:[%s2186_s2 + $0x70] sm:$0xff]  ;;  %v1635_v1 = vld [vmem:[%s2186_s2 + $0x60] sm:$0xff]  ;;  %v37_v8 = vld [vmem:[%s2187_s1 + $0x18] sm:$0xff] }
   0x2   :  { %147 = vmatpush.msra.mxu3 %v1630_v0  ;;  %250 = vmatpush.msra.mxu2 %v1630_v0  ;;  %v1642_v2 = vld [vmem:[%s2186_s2 + $0x50] sm:$0xff]  ;;  %v34_v4 = vld [vmem:[%s2187_s1] sm:$0xff]  ;;  %v35_v9 = vld [vmem:[%s2187_s1 + $0x8] sm:$0xff] }
   0x3   :  { %v36_v3 = vld [vmem:[%s2187_s1 + $0x10] sm:$0xff]  ;;  %v1655_v5 = vld [vmem:[%s2186_s2 + $0x40] sm:$0xff]  ;;  %120 = vmatpush.msra.mxu1 %v37_v8  ;;  %v1693_v12 = vld [vmem:[%s2186_s2 + $0x78] sm:$0xff] }
   0x4   :  { %148 = vmatpush.msra.mxu3 %v1635_v1  ;;  %251 = vmatpush.msra.mxu2 %v1635_v1  ;;  %v54_v6 = vld [vmem:[%s2188_s0] sm:$0xff]  ;;  %v1665_v7 = vld [vmem:[%s2186_s2 + $0x30] sm:$0xff]  ;;  %v1707_v14 = vld [vmem:[%s2186_s2 + $0x68] sm:$0xff] }
   0x5   :  { %91 = vmatpush.msra.mxu0 %v36_v3  ;;  %v1678_v10 = vld [vmem:[%s2186_s2 + $0x20] sm:$0xff]  ;;  %v1686_v11 = vld [vmem:[%s2186_s2 + $0x10] sm:$0xff]  ;;  %121 = vmatpush.msra.mxu1 %v35_v9  ;;  %v1717_v16 = vld [vmem:[%s2186_s2 + $0x58] sm:$0xff] }
   0x6   :  { %149 = vmatpush.msra.mxu3 %v1642_v2  ;;  %252 = vmatpush.msra.mxu2 %v1642_v2  ;;  %v1699_v13 = vld [vmem:[%s2186_s2] sm:$0xff]  ;;  %v1725_v17 = vld [vmem:[%s2186_s2 + $0x48] sm:$0xff]  ;;  %v1734_v18 = vld [vmem:[%s2186_s2 + $0x38] sm:$0xff] }
   0x7   :  { %92 = vmatpush.msra.mxu0 %v34_v4  ;;  %1411 = vmatmul.msk.f32.vlgmr.msra.gmra.mxu1 %vm64_vm0, %v54_v6  ;;  %v1743_v19 = vld [vmem:[%s2186_s2 + $0x28] sm:$0xff]  ;;  %v1752_v20 = vld [vmem:[%s2186_s2 + $0x18] sm:$0xff]  ;;  %v58_v22 = vld [vmem:[%s2189_s3] sm:$0x3] }
   0x8   :  { %150 = vmatpush.msra.mxu3 %v1655_v5  ;;  %1407 = vmatmul.msk.f32.vlgmr.msra.gmra.mxu0 %vm64_vm0, %v54_v6  ;;  %v1761_v21 = vld [vmem:[%s2186_s2 + $0x8] sm:$0xff]  ;;  %v1807_v24 = vperm.slane %v58_v22, 1  ;;  %v1814_v30 = vperm.slane %v58_v22, 0 }
   0x9   :  { %253 = vmatpush.msra.mxu2 %v1655_v5  ;;  %363 = vmatpush.msrb.mxu0 %v1630_v0 }
   0xa   :  { %151 = vmatpush.msra.mxu3 %v1665_v7  ;;  %383 = vmatpush.msrb.mxu1 %v1693_v12 }
   0xb   :  { %254 = vmatpush.msra.mxu2 %v1665_v7  ;;  %364 = vmatpush.msrb.mxu0 %v1635_v1 }
   0xc   :  { %152 = vmatpush.msra.mxu3 %v1678_v10  ;;  %384 = vmatpush.msrb.mxu1 %v1707_v14 }
   0xd   :  { %255 = vmatpush.msra.mxu2 %v1678_v10  ;;  %365 = vmatpush.msrb.mxu0 %v1642_v2 }
   0xe   :  { %153 = vmatpush.msra.mxu3 %v1686_v11  ;;  %385 = vmatpush.msrb.mxu1 %v1717_v16 }
   0xf   :  { %256 = vmatpush.msra.mxu2 %v1686_v11  ;;  %366 = vmatpush.msrb.mxu0 %v1655_v5 }
  0x10   :  { %154 = vmatpush.msra.mxu3 %v1699_v13  ;;  %386 = vmatpush.msrb.mxu1 %v1725_v17 }
  0x11   :  { %155 = vmatmul.f32.vlgmr.msra.gmra.mxu3 %v1575_v15  ;;  %257 = vmatpush.msra.mxu2 %v1699_v13 }
  0x12   :  { %167 = vmatpush.msrb.mxu3 %v1693_v12  ;;  %367 = vmatpush.msrb.mxu0 %v1665_v7 }
  0x13   :  { %468 = vmatpush.msrb.mxu2 %v1630_v0  ;;  %387 = vmatpush.msrb.mxu1 %v1734_v18 }
  0x14   :  { %168 = vmatpush.msrb.mxu3 %v1707_v14  ;;  %368 = vmatpush.msrb.mxu0 %v1678_v10 }
  0x15   :  { %469 = vmatpush.msrb.mxu2 %v1635_v1  ;;  %388 = vmatpush.msrb.mxu1 %v1743_v19 }
  0x16   :  { %169 = vmatpush.msrb.mxu3 %v1717_v16  ;;  %369 = vmatpush.msrb.mxu0 %v1686_v11 }
  0x17   :  { %470 = vmatpush.msrb.mxu2 %v1642_v2  ;;  %389 = vmatpush.msrb.mxu1 %v1752_v20 }
  0x18   :  { %170 = vmatpush.msrb.mxu3 %v1725_v17  ;;  %370 = vmatpush.msrb.mxu0 %v1699_v13 }
  0x19   :  { %471 = vmatpush.msrb.mxu2 %v1655_v5  ;;  %390 = vmatpush.msrb.mxu1 %v1761_v21 }
  0x1a   :  { %171 = vmatpush.msrb.mxu3 %v1734_v18  ;;  %580 = vmatpush.msra.mxu0 %v1630_v0 }
  0x1b   :  { %472 = vmatpush.msrb.mxu2 %v1665_v7  ;;  %600 = vmatpush.msra.mxu1 %v1693_v12 }
  0x1c   :  { %172 = vmatpush.msrb.mxu3 %v1743_v19  ;;  %581 = vmatpush.msra.mxu0 %v1635_v1 }
  0x1d   :  { %473 = vmatpush.msrb.mxu2 %v1678_v10  ;;  %601 = vmatpush.msra.mxu1 %v1707_v14 }
  0x1e   :  { %173 = vmatpush.msrb.mxu3 %v1752_v20  ;;  %582 = vmatpush.msra.mxu0 %v1642_v2 }
  0x1f   :  { %474 = vmatpush.msrb.mxu2 %v1686_v11  ;;  %602 = vmatpush.msra.mxu1 %v1717_v16 }
  0x20   :  { %174 = vmatpush.msrb.mxu3 %v1761_v21  ;;  %583 = vmatpush.msra.mxu0 %v1655_v5 }
  0x21   :  { %175 = vmatmul.f32.vlgmr.msrb.gmra.mxu3 %v1575_v15  ;;  %475 = vmatpush.msrb.mxu2 %v1699_v13 }
  0x22   :  { %270 = vmatpush.msra.mxu3 %v1693_v12  ;;  %603 = vmatpush.msra.mxu1 %v1725_v17 }
  0x23   :  { %584 = vmatpush.msra.mxu0 %v1665_v7 }
  0x24   :  { %271 = vmatpush.msra.mxu3 %v1707_v14  ;;  %604 = vmatpush.msra.mxu1 %v1734_v18 }
  0x25   :  { %585 = vmatpush.msra.mxu0 %v1678_v10 }
  0x26   :  { %272 = vmatpush.msra.mxu3 %v1717_v16  ;;  %605 = vmatpush.msra.mxu1 %v1743_v19 }
  0x27   :  { %586 = vmatpush.msra.mxu0 %v1686_v11 }
  0x28   :  { %273 = vmatpush.msra.mxu3 %v1725_v17  ;;  %606 = vmatpush.msra.mxu1 %v1752_v20 }
  0x29   :  { %587 = vmatpush.msra.mxu0 %v1699_v13 }
  0x2a   :  { %274 = vmatpush.msra.mxu3 %v1734_v18  ;;  %607 = vmatpush.msra.mxu1 %v1761_v21 }
  0x2c   :  { %275 = vmatpush.msra.mxu3 %v1743_v19 }
  0x2e   :  { %276 = vmatpush.msra.mxu3 %v1752_v20 }
  0x30   :  { %277 = vmatpush.msra.mxu3 %v1761_v21 }
  0x32   :  { %488 = vmatpush.msrb.mxu3 %v1693_v12 }
  0x34   :  { %489 = vmatpush.msrb.mxu3 %v1707_v14 }
  0x36   :  { %490 = vmatpush.msrb.mxu3 %v1717_v16 }
  0x38   :  { %491 = vmatpush.msrb.mxu3 %v1725_v17 }
  0x3a   :  { %492 = vmatpush.msrb.mxu3 %v1734_v18 }
  0x3c   :  { %493 = vmatpush.msrb.mxu3 %v1743_v19 }
  0x3e   :  { %494 = vmatpush.msrb.mxu3 %v1752_v20 }
  0x40   :  { %495 = vmatpush.msrb.mxu3 %v1761_v21 }
  0x84   :  { %v123_v25 = vpop.f32.mrf.mxu1 }
  0x85   :  { %v1810_v26 = vadd.f32 %v123_v25, %v1807_v24  ;;  %v94_v31 = vpop.f32.mrf.mxu0 }
  0x86   :  { %v1817_v32 = vadd.f32 %v94_v31, %v1814_v30 }
  0x94   :  { %v156_v23 = vpop.f32.mrf.mxu3 }
  0x95   :  { %v179_v33 = vadd.f32 %v156_v23, %v1817_v32 }
  0x97   :  { %v1415_v34 = vmul.f32 -1.442695, %v179_v33 }
  0xa4   :  { %v176_v27 = vpop.f32.mrf.mxu3 }
  0xa5   :  { %v180_v28 = vadd.f32 %v176_v27, %v1810_v26 }
  0xa7   :  { %1461 = vtanh.f32 %v180_v28  ;;  %v1416_v53 = vmul.f32 -1.442695, %v180_v28 }
  0xa8   :  { %1463 = vpow2.f32 %v1415_v34 }
  0xad   :  { %v1462_v29 = vpop.eup %1461 }
  0xae   :  { %222 = vrot.lane.b32.xlu0 %v1462_v29, %s1576_s30  ;;  %v1464_v35 = vpop.eup %1463 }
  0xaf   :  { %v187_v36 = vadd.f32 1.0, %v1464_v35 }
  0xb1   :  { %1465 = vrcp.f32 %v187_v36  ;;  %vm194_vm1 = vweird.f32 %v187_v36  ;;  %v200_v42 = vand.u32 2147483648, %v187_v36  ;;  %v198_v43 = vand.u32 2147483647, %v187_v36 }
  0xb3   :  { %v201_v45 = vor.u32 1.1754944e-38, %v200_v42  ;;  %vm199_vm4 = vcmp.eq.f32.partialorder %v198_v43, 8.507059e+37 }
  0xb7   :  { %v1466_v37 = vpop.eup %1465 }
  0xb8   :  { %v190_v38 = vmul.f32 %v1466_v37, %v187_v36  ;;  %vm195_vm2 = vweird.f32 %v1466_v37 }
  0xb9   :  { %vm196_vm3 = vmor %vm194_vm1, %vm195_vm2 }
  0xba   :  { %v191_v39 = vsub.f32 1.0, %v190_v38 }
  0xbc   :  { %v192_v40 = vmul.f32 %v1466_v37, %v191_v39 }
  0xbe   :  { %v193_v41 = vadd.f32 %v1466_v37, %v192_v40 }
  0xc0   :  { %v197_v44 = vsel %vm196_vm3, %v1466_v37, %v193_v41  ;;  %vm349_vm3 = vcmask 523268  }
  0xc1   :  { %v202_v47 = vsel %vm199_vm4, %v201_v45, %v197_v44  ;;  %v55_v44 = vld [vmem:[%s2188_s0 + $0x8] sm:$0xff]  ;;  %v56_v45 = vld [vmem:[%s2188_s0 + $0x10] sm:$0xff] }
  0xc2   :  { %v220_v49 = vmul.f32 0.0, %v202_v47  ;;  %1408 = vmatmul.msk.f32.gmra.mxu0 %vm64_vm0, %v55_v44  ;;  %1412 = vmatmul.msk.f32.gmra.mxu1 %vm64_vm0, %v55_v44 }
  0xca   :  { %1409 = vmatmul.msk.f32.gmra.mxu0 %vm64_vm0, %v56_v45  ;;  %1413 = vmatmul.msk.f32.gmra.mxu1 %vm64_vm0, %v56_v45 }
 0x120   :  { %v223_v46 = vpop.permute.xlu0 %222 }
 0x121   :  { %v225_v48 = vmul.f32 %v223_v46, %v202_v47  ;;  %v57_v46 = vld [vmem:[%s2188_s0 + $0x18] sm:$0xff] }
 0x122   :  { %1410 = vmatmul.msk.f32.gmra.mxu0 %vm64_vm0, %v57_v46  ;;  %1414 = vmatmul.msk.f32.gmra.mxu1 %vm64_vm0, %v57_v46 }
 0x123   :  { %227 = vrot.lane.b32.xlu0 %v225_v48, %s1576_s30 }
 0x195   :  { %v228_v50 = vpop.permute.xlu0 %227 }
 0x196   :  { %v1821_v51 = vadd.f32 %v228_v50, %v220_v49 }
 0x198   :  { %1467 = vtanh.f32 %v1821_v51  ;;  %v330_v47 = vrot.slane %v1821_v51, 4 }
 0x199   :  { %1469 = vpow2.f32 %v1416_v53 }
 0x19e   :  { %v1468_v52 = vpop.eup %1467 }
 0x19f   :  { %233 = vrot.lane.b32.xlu1 %v1468_v52, %s1576_s30  ;;  %v1470_v54 = vpop.eup %1469 }
 0x1a0   :  { %v188_v55 = vadd.f32 1.0, %v1470_v54 }
 0x1a2   :  { %1471 = vrcp.f32 %v188_v55  ;;  %v215_v61 = vand.u32 2147483648, %v188_v55  ;;  %vm209_vm6 = vweird.f32 %v188_v55  ;;  %v213_v62 = vand.u32 2147483647, %v188_v55 }
 0x1a4   :  { %v216_v3 = vor.u32 1.1754944e-38, %v215_v61  ;;  %vm214_vm8 = vcmp.eq.f32.partialorder %v213_v62, 8.507059e+37 }
 0x1a8   :  { %v1472_v56 = vpop.eup %1471 }
 0x1a9   :  { %v205_v57 = vmul.f32 %v1472_v56, %v188_v55  ;;  %vm210_vm5 = vweird.f32 %v1472_v56 }
 0x1aa   :  { %vm211_vm7 = vmor %vm209_vm6, %vm210_vm5 }
 0x1ab   :  { %v206_v58 = vsub.f32 1.0, %v205_v57 }
 0x1ad   :  { %v207_v59 = vmul.f32 %v1472_v56, %v206_v58 }
 0x1af   :  { %v208_v60 = vadd.f32 %v1472_v56, %v207_v59 }
 0x1b1   :  { %v212_v63 = vsel %vm211_vm7, %v1472_v56, %v208_v60 }
 0x1b2   :  { %v217_v4 = vsel %vm214_vm8, %v216_v3, %v212_v63 }
 0x211   :  { %v234_v6 = vpop.permute.xlu1 %233 }
 0x212   :  { %v236_v8 = vmul.f32 %v234_v6, %v217_v4 }
 0x214   :  { %238 = vst.msk [vmem:[#allocation2] sm:$0xf] %vm237_vm9, %v236_v8  ;;  %1417 = vmatmul.msk.f32.vlgmr.msra.gmra.mxu2 %vm135_vm10, %v236_v8  ;;  %1418 = vmatmul.msk.f32.vlgmr.msra.gmra.mxu3 %vm135_vm10, %v236_v8 }
 0x215   :  { %685 = vmatpush.msra.mxu2 %v1630_v0  ;;  %705 = vmatpush.msra.mxu3 %v1693_v12 }
 0x217   :  { %686 = vmatpush.msra.mxu2 %v1635_v1  ;;  %706 = vmatpush.msra.mxu3 %v1707_v14 }
 0x219   :  { %687 = vmatpush.msra.mxu2 %v1642_v2  ;;  %707 = vmatpush.msra.mxu3 %v1717_v16 }
 0x21b   :  { %688 = vmatpush.msra.mxu2 %v1655_v5  ;;  %708 = vmatpush.msra.mxu3 %v1725_v17 }
 0x21d   :  { %689 = vmatpush.msra.mxu2 %v1665_v7  ;;  %709 = vmatpush.msra.mxu3 %v1734_v18 }
 0x21f   :  { %690 = vmatpush.msra.mxu2 %v1678_v10  ;;  %710 = vmatpush.msra.mxu3 %v1743_v19 }
 0x221   :  { %691 = vmatpush.msra.mxu2 %v1686_v11  ;;  %711 = vmatpush.msra.mxu3 %v1752_v20 }
 0x223   :  { %692 = vmatpush.msra.mxu2 %v1699_v13  ;;  %712 = vmatpush.msra.mxu3 %v1761_v21 }
 0x297   :  { %v279_v9 = vpop.f32.mrf.mxu3  ;;  %v259_v25 = vpop.f32.mrf.mxu2 }
 0x298   :  { %v285_v15 = vrot.slane %v279_v9, 4  ;;  %v284_v27 = vrot.slane %v259_v25, 4  ;;  %v126_v9 = vpop.f32.mrf.mxu1 }
 0x29a   :  { %v289_v22 = vadd.f32 %v285_v15, %v1810_v26  ;;  %v288_v28 = vadd.f32 %v284_v27, %v1817_v32 }
 0x29c   :  { %1473 = vtanh.f32 %v289_v22  ;;  %v1419_v29 = vmul.f32 -1.442695, %v288_v28  ;;  %v1420_v53 = vmul.f32 -1.442695, %v289_v22 }
 0x29e   :  { %1475 = vpow2.f32 %v1419_v29  ;;  %v97_v29 = vpop.f32.mrf.mxu0 }
 0x2a0   :  { %v1887_v15 = vpop.f32.mrf.mxu1 }
 0x2a2   :  { %v1474_v23 = vpop.eup %1473 }
 0x2a3   :  { %334 = vrot.lane.b32.xlu1 %v1474_v23, %s1576_s30  ;;  %v1892_v23 = vadd.f32 %v126_v9, %v1807_v24 }
 0x2a4   :  { %v1476_v31 = vpop.eup %1475 }
 0x2a5   :  { %v296_v33 = vadd.f32 1.0, %v1476_v31 }
 0x2a6   :  { %v1896_v31 = vpop.f32.mrf.mxu0 }
 0x2a7   :  { %1477 = vrcp.f32 %v296_v33  ;;  %v309_v26 = vand.u32 2147483648, %v296_v33  ;;  %vm303_vm12 = vweird.f32 %v296_v33  ;;  %v307_v39 = vand.u32 2147483647, %v296_v33 }
 0x2a8   :  { %v1889_v22 = vpop.f32.mrf.mxu1 }
 0x2a9   :  { %v310_v41 = vor.u32 1.1754944e-38, %v309_v26  ;;  %vm308_vm14 = vcmp.eq.f32.partialorder %v307_v39, 8.507059e+37 }
 0x2ad   :  { %v1478_v34 = vpop.eup %1477 }
 0x2ae   :  { %v299_v35 = vmul.f32 %v1478_v34, %v296_v33  ;;  %vm304_vm11 = vweird.f32 %v1478_v34  ;;  %v1898_v33 = vpop.f32.mrf.mxu0 }
 0x2af   :  { %vm305_vm13 = vmor %vm303_vm12, %vm304_vm11 }
 0x2b0   :  { %v300_v36 = vsub.f32 1.0, %v299_v35 }
 0x2b2   :  { %v301_v37 = vmul.f32 %v1478_v34, %v300_v36 }
 0x2b4   :  { %v302_v38 = vadd.f32 %v1478_v34, %v301_v37 }
 0x2b6   :  { %v306_v40 = vsel %vm305_vm13, %v1478_v34, %v302_v38  ;;  %v1901_v34 = vadd.f32 %v97_v29, %v1814_v30 }
 0x2b7   :  { %v311_v32 = vsel %vm308_vm14, %v310_v41, %v306_v40 }
 0x2b8   :  { %v332_v48 = vmul.f32 %v330_v47, %v311_v32 }
 0x315   :  { %v335_v42 = vpop.permute.xlu1 %334 }
 0x316   :  { %v337_v43 = vmul.f32 %v335_v42, %v311_v32 }
 0x318   :  { %339 = vrot.lane.b32.xlu2 %v337_v43, %s1576_s30 }
 0x372   :  { %v340_v49 = vpop.permute.xlu2 %339 }
 0x373   :  { %v1864_v50 = vadd.f32 %v340_v49, %v332_v48 }
 0x375   :  { %1479 = vtanh.f32 %v1864_v50 }
 0x376   :  { %1481 = vpow2.f32 %v1420_v53 }
 0x37b   :  { %v1480_v52 = vpop.eup %1479 }
 0x37c   :  { %345 = vrot.lane.b32.xlu2 %v1480_v52, %s1576_s30  ;;  %v1482_v54 = vpop.eup %1481  ;;  %v437_v52 = vrot.slane %v1864_v50, 4 }
 0x37d   :  { %v297_v55 = vadd.f32 1.0, %v1482_v54 }
 0x37f   :  { %1483 = vrcp.f32 %v297_v55  ;;  %v324_v51 = vand.u32 2147483648, %v297_v55  ;;  %vm318_vm0 = vweird.f32 %v297_v55  ;;  %v322_v61 = vand.u32 2147483647, %v297_v55 }
 0x381   :  { %v325_v63 = vor.u32 1.1754944e-38, %v324_v51  ;;  %vm323_vm2 = vcmp.eq.f32.partialorder %v322_v61, 8.507059e+37 }
 0x385   :  { %v1484_v56 = vpop.eup %1483 }
 0x386   :  { %v314_v57 = vmul.f32 %v1484_v56, %v297_v55  ;;  %vm319_vm15 = vweird.f32 %v1484_v56 }
 0x387   :  { %vm320_vm1 = vmor %vm318_vm0, %vm319_vm15 }
 0x388   :  { %v315_v58 = vsub.f32 1.0, %v314_v57 }
 0x38a   :  { %v316_v59 = vmul.f32 %v1484_v56, %v315_v58 }
 0x38c   :  { %v317_v60 = vadd.f32 %v1484_v56, %v316_v59 }
 0x38e   :  { %v321_v62 = vsel %vm320_vm1, %v1484_v56, %v317_v60 }
 0x38f   :  { %v326_v3 = vsel %vm323_vm2, %v325_v63, %v321_v62 }
 0x3d6   :  { %v346_v4 = vpop.permute.xlu2 %345 }
 0x3d7   :  { %v348_v6 = vmul.f32 %v346_v4, %v326_v3 }
 0x3d9   :  { %350 = vst.msk [vmem:[#allocation2] sm:$0xf0] %vm349_vm3, %v348_v6  ;;  %v352_v8 = vrot.slane %v348_v6, 4 }
 0x3db   :  { %1421 = vmatmul.msk.f32.vlgmr.msrb.gmra.mxu0 %vm135_vm10, %v352_v8  ;;  %1422 = vmatmul.msk.f32.vlgmr.msrb.gmra.mxu1 %vm135_vm10, %v352_v8 }
 0x3dc   :  { %797 = vmatpush.msrb.mxu0 %v1630_v0  ;;  %817 = vmatpush.msrb.mxu1 %v1693_v12 }
 0x3de   :  { %798 = vmatpush.msrb.mxu0 %v1635_v1  ;;  %818 = vmatpush.msrb.mxu1 %v1707_v14 }
 0x3e0   :  { %799 = vmatpush.msrb.mxu0 %v1642_v2  ;;  %819 = vmatpush.msrb.mxu1 %v1717_v16 }
 0x3e2   :  { %800 = vmatpush.msrb.mxu0 %v1655_v5  ;;  %820 = vmatpush.msrb.mxu1 %v1725_v17 }
 0x3e4   :  { %801 = vmatpush.msrb.mxu0 %v1665_v7  ;;  %821 = vmatpush.msrb.mxu1 %v1734_v18 }
 0x3e6   :  { %802 = vmatpush.msrb.mxu0 %v1678_v10  ;;  %822 = vmatpush.msrb.mxu1 %v1743_v19 }
 0x3e8   :  { %803 = vmatpush.msrb.mxu0 %v1686_v11  ;;  %823 = vmatpush.msrb.mxu1 %v1752_v20 }
 0x3ea   :  { %804 = vmatpush.msrb.mxu0 %v1699_v13  ;;  %824 = vmatpush.msrb.mxu1 %v1761_v21 }
 0x458   :  { %v392_v25 = vpop.f32.mrf.mxu1  ;;  %v372_v35 = vpop.f32.mrf.mxu0 }
 0x459   :  { %v396_v27 = vadd.f32 %v392_v25, %v1892_v23  ;;  %v395_v36 = vadd.f32 %v372_v35, %v1901_v34 }
 0x45b   :  { %1485 = vtanh.f32 %v396_v27  ;;  %v1423_v37 = vmul.f32 -1.442695, %v395_v36  ;;  %v1424_v57 = vmul.f32 -1.442695, %v396_v27 }
 0x45d   :  { %1487 = vpow2.f32 %v1423_v37 }
 0x461   :  { %v1486_v28 = vpop.eup %1485 }
 0x462   :  { %441 = vrot.lane.b32.xlu0 %v1486_v28, %s1576_s30 }
 0x463   :  { %v1488_v38 = vpop.eup %1487 }
 0x464   :  { %v403_v26 = vadd.f32 1.0, %v1488_v38 }
 0x466   :  { %1489 = vrcp.f32 %v403_v26  ;;  %v416_v43 = vand.u32 2147483648, %v403_v26  ;;  %vm410_vm5 = vweird.f32 %v403_v26  ;;  %v414_v44 = vand.u32 2147483647, %v403_v26 }
 0x468   :  { %v417_v46 = vor.u32 1.1754944e-38, %v416_v43  ;;  %vm415_vm7 = vcmp.eq.f32.partialorder %v414_v44, 8.507059e+37 }
 0x46c   :  { %v1490_v39 = vpop.eup %1489 }
 0x46d   :  { %v406_v40 = vmul.f32 %v1490_v39, %v403_v26  ;;  %vm411_vm4 = vweird.f32 %v1490_v39 }
 0x46e   :  { %vm412_vm6 = vmor %vm410_vm5, %vm411_vm4 }
 0x46f   :  { %v407_v41 = vsub.f32 1.0, %v406_v40 }
 0x471   :  { %v408_v42 = vmul.f32 %v1490_v39, %v407_v41 }
 0x473   :  { %v409_v32 = vadd.f32 %v1490_v39, %v408_v42 }
 0x475   :  { %v413_v45 = vsel %vm412_vm6, %v1490_v39, %v409_v32 }
 0x476   :  { %v418_v48 = vsel %vm415_vm7, %v417_v46, %v413_v45 }
 0x477   :  { %v439_v53 = vmul.f32 %v437_v52, %v418_v48 }
 0x4d4   :  { %v442_v47 = vpop.permute.xlu0 %441 }
 0x4d5   :  { %v444_v49 = vmul.f32 %v442_v47, %v418_v48 }
 0x4d7   :  { %446 = vrot.lane.b32.xlu1 %v444_v49, %s1576_s30 }
 0x549   :  { %v447_v54 = vpop.permute.xlu1 %446 }
 0x54a   :  { %v1906_v55 = vadd.f32 %v447_v54, %v439_v53 }
 0x54c   :  { %1491 = vtanh.f32 %v1906_v55  ;;  %v548_v36 = vrot.slane %v1906_v55, 4 }
 0x54d   :  { %1493 = vpow2.f32 %v1424_v57  ;;  %v1940_v57 = vadd.f32 %v1887_v15, %v1807_v24 }
 0x552   :  { %v1492_v56 = vpop.eup %1491 }
 0x553   :  { %452 = vrot.lane.b32.xlu2 %v1492_v56, %s1576_s30  ;;  %v1494_v58 = vpop.eup %1493 }
 0x554   :  { %v404_v59 = vadd.f32 1.0, %v1494_v58 }
 0x556   :  { %1495 = vrcp.f32 %v404_v59  ;;  %v431_v50 = vand.u32 2147483648, %v404_v59  ;;  %vm425_vm11 = vweird.f32 %v404_v59  ;;  %v429_v3 = vand.u32 2147483647, %v404_v59 }
 0x558   :  { %v432_v6 = vor.u32 1.1754944e-38, %v431_v50  ;;  %vm430_vm13 = vcmp.eq.f32.partialorder %v429_v3, 8.507059e+37 }
 0x55c   :  { %v1496_v60 = vpop.eup %1495 }
 0x55d   :  { %v421_v51 = vmul.f32 %v1496_v60, %v404_v59  ;;  %vm426_vm8 = vweird.f32 %v1496_v60 }
 0x55e   :  { %vm427_vm12 = vmor %vm425_vm11, %vm426_vm8 }
 0x55f   :  { %v422_v61 = vsub.f32 1.0, %v421_v51 }
 0x561   :  { %v423_v62 = vmul.f32 %v1496_v60, %v422_v61  ;;  %v1946_v61 = vadd.f32 %v1896_v31, %v1814_v30 }
 0x563   :  { %v424_v63 = vadd.f32 %v1496_v60, %v423_v62 }
 0x565   :  { %v428_v4 = vsel %vm427_vm12, %v1496_v60, %v424_v63 }
 0x566   :  { %v433_v8 = vsel %vm430_vm13, %v432_v6, %v428_v4 }
 0x5ad   :  { %v453_v9 = vpop.permute.xlu2 %452 }
 0x5ae   :  { %v455_v25 = vmul.f32 %v453_v9, %v433_v8 }
 0x5b0   :  { %456 = vst.msk [vmem:[#allocation2 + $0x8] sm:$0xf] %vm237_vm9, %v455_v25  ;;  %1425 = vmatmul.msk.f32.vlgmr.msrb.gmra.mxu2 %vm135_vm10, %v455_v25  ;;  %1426 = vmatmul.msk.f32.vlgmr.msrb.gmra.mxu3 %vm135_vm10, %v455_v25 }
 0x5b1   :  { %902 = vmatpush.msrb.mxu2 %v1630_v0  ;;  %922 = vmatpush.msrb.mxu3 %v1693_v12 }
 0x5b3   :  { %903 = vmatpush.msrb.mxu2 %v1635_v1  ;;  %923 = vmatpush.msrb.mxu3 %v1707_v14 }
 0x5b5   :  { %904 = vmatpush.msrb.mxu2 %v1642_v2  ;;  %924 = vmatpush.msrb.mxu3 %v1717_v16 }
 0x5b7   :  { %905 = vmatpush.msrb.mxu2 %v1655_v5  ;;  %925 = vmatpush.msrb.mxu3 %v1725_v17 }
 0x5b9   :  { %906 = vmatpush.msrb.mxu2 %v1665_v7  ;;  %926 = vmatpush.msrb.mxu3 %v1734_v18 }
 0x5bb   :  { %907 = vmatpush.msrb.mxu2 %v1678_v10  ;;  %927 = vmatpush.msrb.mxu3 %v1743_v19 }
 0x5bd   :  { %908 = vmatpush.msrb.mxu2 %v1686_v11  ;;  %928 = vmatpush.msrb.mxu3 %v1752_v20 }
 0x5bf   :  { %909 = vmatpush.msrb.mxu2 %v1699_v13  ;;  %929 = vmatpush.msrb.mxu3 %v1761_v21 }
 0x633   :  { %v497_v0 = vpop.f32.mrf.mxu3  ;;  %v477_v7 = vpop.f32.mrf.mxu2 }
 0x634   :  { %v503_v1 = vrot.slane %v497_v0, 4  ;;  %v502_v10 = vrot.slane %v477_v7, 4 }
 0x636   :  { %v507_v2 = vadd.f32 %v503_v1, %v1892_v23  ;;  %v506_v12 = vadd.f32 %v502_v10, %v1901_v34 }
 0x638   :  { %1497 = vtanh.f32 %v507_v2  ;;  %v1427_v14 = vmul.f32 -1.442695, %v506_v12  ;;  %v1428_v40 = vmul.f32 -1.442695, %v507_v2 }
 0x63a   :  { %1499 = vpow2.f32 %v1427_v14 }
 0x63e   :  { %v1498_v5 = vpop.eup %1497 }
 0x63f   :  { %552 = vrot.lane.b32.xlu0 %v1498_v5, %s1576_s30 }
 0x640   :  { %v1500_v11 = vpop.eup %1499 }
 0x641   :  { %v514_v16 = vadd.f32 1.0, %v1500_v11 }
 0x643   :  { %1501 = vrcp.f32 %v514_v16  ;;  %v527_v21 = vand.u32 2147483648, %v514_v16  ;;  %vm521_vm15 = vweird.f32 %v514_v16  ;;  %v525_v23 = vand.u32 2147483647, %v514_v16 }
 0x645   :  { %v528_v28 = vor.u32 1.1754944e-38, %v527_v21  ;;  %vm526_vm1 = vcmp.eq.f32.partialorder %v525_v23, 8.507059e+37 }
 0x649   :  { %v1502_v13 = vpop.eup %1501 }
 0x64a   :  { %v517_v17 = vmul.f32 %v1502_v13, %v514_v16  ;;  %vm522_vm14 = vweird.f32 %v1502_v13 }
 0x64b   :  { %vm523_vm0 = vmor %vm521_vm15, %vm522_vm14 }
 0x64c   :  { %v518_v18 = vsub.f32 1.0, %v517_v17 }
 0x64e   :  { %v519_v19 = vmul.f32 %v1502_v13, %v518_v18 }
 0x650   :  { %v520_v20 = vadd.f32 %v1502_v13, %v519_v19 }
 0x652   :  { %v524_v27 = vsel %vm523_vm0, %v1502_v13, %v520_v20 }
 0x653   :  { %v529_v34 = vsel %vm526_vm1, %v528_v28, %v524_v27 }
 0x654   :  { %v550_v37 = vmul.f32 %v548_v36, %v529_v34 }
 0x6b1   :  { %v553_v29 = vpop.permute.xlu0 %552 }
 0x6b2   :  { %v555_v35 = vmul.f32 %v553_v29, %v529_v34 }
 0x6b4   :  { %557 = vrot.lane.b32.xlu1 %v555_v35, %s1576_s30 }
 0x726   :  { %v558_v38 = vpop.permute.xlu1 %557 }
 0x727   :  { %v560_v26 = vadd.f32 %v558_v38, %v550_v37 }
 0x729   :  { %1503 = vtanh.f32 %v560_v26  ;;  %v654_v10 = vrot.slane %v560_v26, 4 }
 0x72a   :  { %1505 = vpow2.f32 %v1428_v40 }
 0x72f   :  { %v1504_v39 = vpop.eup %1503 }
 0x730   :  { %563 = vrot.lane.b32.xlu2 %v1504_v39, %s1576_s30  ;;  %v1506_v41 = vpop.eup %1505 }
 0x731   :  { %v515_v42 = vadd.f32 1.0, %v1506_v41 }
 0x733   :  { %1507 = vrcp.f32 %v515_v42  ;;  %v542_v47 = vand.u32 2147483648, %v515_v42  ;;  %vm536_vm4 = vweird.f32 %v515_v42  ;;  %v540_v48 = vand.u32 2147483647, %v515_v42 }
 0x735   :  { %v543_v52 = vor.u32 1.1754944e-38, %v542_v47  ;;  %vm541_vm6 = vcmp.eq.f32.partialorder %v540_v48, 8.507059e+37 }
 0x739   :  { %v1508_v32 = vpop.eup %1507 }
 0x73a   :  { %v532_v43 = vmul.f32 %v1508_v32, %v515_v42  ;;  %vm537_vm2 = vweird.f32 %v1508_v32 }
 0x73b   :  { %vm538_vm5 = vmor %vm536_vm4, %vm537_vm2 }
 0x73c   :  { %v533_v44 = vsub.f32 1.0, %v532_v43 }
 0x73e   :  { %v534_v45 = vmul.f32 %v1508_v32, %v533_v44 }
 0x740   :  { %v535_v46 = vadd.f32 %v1508_v32, %v534_v45 }
 0x742   :  { %v539_v49 = vsel %vm538_vm5, %v1508_v32, %v535_v46 }
 0x743   :  { %v544_v53 = vsel %vm541_vm6, %v543_v52, %v539_v49 }
 0x78a   :  { %v564_v54 = vpop.permute.xlu2 %563 }
 0x78b   :  { %v566_v55 = vmul.f32 %v564_v54, %v544_v53 }
 0x78d   :  { %567 = vst.msk [vmem:[#allocation2 + $0x8] sm:$0xf0] %vm349_vm3, %v566_v55  ;;  %v569_v56 = vrot.slane %v566_v55, 4 }
 0x78f   :  { %1429 = vmatmul.msk.f32.vlgmr.msra.gmra.mxu0 %vm135_vm10, %v569_v56  ;;  %1430 = vmatmul.msk.f32.vlgmr.msra.gmra.mxu1 %vm135_vm10, %v569_v56 }
 0x80c   :  { %v609_v58 = vpop.f32.mrf.mxu1  ;;  %v589_v51 = vpop.f32.mrf.mxu0 }
 0x80d   :  { %v613_v59 = vadd.f32 %v609_v58, %v1940_v57  ;;  %v612_v62 = vadd.f32 %v589_v51, %v1946_v61  ;;  %v1020_v51 = vld [vmem:[%s2190_s4 + $0x70] sm:$0xff] }
 0x80e   :  { %1048 = vmatpush.msra.mxu0 %v1020_v51 }
 0x80f   :  { %1509 = vtanh.f32 %v613_v59  ;;  %v1431_v63 = vmul.f32 -1.442695, %v612_v62  ;;  %v1432_v13 = vmul.f32 -1.442695, %v613_v59  ;;  %v1018_v62 = vld [vmem:[%s2190_s4 + $0x60] sm:$0xff] }
 0x810   :  { %1049 = vmatpush.msra.mxu0 %v1018_v62 }
 0x811   :  { %1511 = vpow2.f32 %v1431_v63  ;;  %v1019_v63 = vld [vmem:[%s2190_s4 + $0x68] sm:$0xff] }
 0x815   :  { %v1510_v60 = vpop.eup %1509 }
 0x816   :  { %658 = vrot.lane.b32.xlu0 %v1510_v60, %s1576_s30 }
 0x817   :  { %v1512_v50 = vpop.eup %1511 }
 0x818   :  { %v620_v3 = vadd.f32 1.0, %v1512_v50 }
 0x81a   :  { %1513 = vrcp.f32 %v620_v3  ;;  %v633_v25 = vand.u32 2147483648, %v620_v3  ;;  %vm627_vm8 = vweird.f32 %v620_v3  ;;  %v631_v0 = vand.u32 2147483647, %v620_v3 }
 0x81c   :  { %v634_v31 = vor.u32 1.1754944e-38, %v633_v25  ;;  %vm632_vm12 = vcmp.eq.f32.partialorder %v631_v0, 8.507059e+37  ;;  %v1016_v0 = vld [vmem:[%s2190_s4 + $0x50] sm:$0xff] }
 0x81d   :  { %1050 = vmatpush.msra.mxu0 %v1016_v0 }
 0x820   :  { %v1514_v15 = vpop.eup %1513 }
 0x821   :  { %v623_v4 = vmul.f32 %v1514_v15, %v620_v3  ;;  %vm628_vm7 = vweird.f32 %v1514_v15 }
 0x822   :  { %vm629_vm11 = vmor %vm627_vm8, %vm628_vm7 }
 0x823   :  { %v624_v6 = vsub.f32 1.0, %v623_v4 }
 0x825   :  { %v625_v8 = vmul.f32 %v1514_v15, %v624_v6 }
 0x827   :  { %v626_v9 = vadd.f32 %v1514_v15, %v625_v8 }
 0x829   :  { %v630_v1 = vsel %vm629_vm11, %v1514_v15, %v626_v9 }
 0x82a   :  { %v635_v5 = vsel %vm632_vm12, %v634_v31, %v630_v1  ;;  %v1017_v1 = vld [vmem:[%s2190_s4 + $0x58] sm:$0xff]  ;;  %v1014_v31 = vld [vmem:[%s2190_s4 + $0x40] sm:$0xff] }
 0x82b   :  { %v656_v12 = vmul.f32 %v654_v10, %v635_v5  ;;  %1051 = vmatpush.msra.mxu0 %v1014_v31  ;;  %v1010_v10 = vld [vmem:[%s2190_s4 + $0x20] sm:$0xff] }
 0x888   :  { %v659_v2 = vpop.permute.xlu0 %658 }
 0x889   :  { %v661_v7 = vmul.f32 %v659_v2, %v635_v5  ;;  %v1015_v2 = vld [vmem:[%s2190_s4 + $0x48] sm:$0xff]  ;;  %v1012_v5 = vld [vmem:[%s2190_s4 + $0x30] sm:$0xff] }
 0x88a   :  { %1052 = vmatpush.msra.mxu0 %v1012_v5 }
 0x88b   :  { %663 = vrot.lane.b32.xlu1 %v661_v7, %s1576_s30  ;;  %v1013_v7 = vld [vmem:[%s2190_s4 + $0x38] sm:$0xff] }
 0x88c   :  { %1053 = vmatpush.msra.mxu0 %v1010_v10 }
 0x8fd   :  { %v664_v14 = vpop.permute.xlu1 %663 }
 0x8fe   :  { %v1950_v11 = vadd.f32 %v664_v14, %v656_v12  ;;  %v1011_v12 = vld [vmem:[%s2190_s4 + $0x28] sm:$0xff]  ;;  %v1008_v14 = vld [vmem:[%s2190_s4 + $0x10] sm:$0xff] }
 0x8ff   :  { %1054 = vmatpush.msra.mxu0 %v1008_v14 }
 0x900   :  { %1515 = vtanh.f32 %v1950_v11  ;;  %v765_v50 = vrot.slane %v1950_v11, 4  ;;  %v1009_v11 = vld [vmem:[%s2190_s4 + $0x18] sm:$0xff] }
 0x901   :  { %1517 = vpow2.f32 %v1432_v13  ;;  %v1006_v13 = vld [vmem:[%s2190_s4] sm:$0xff] }
 0x902   :  { %1055 = vmatpush.msra.mxu0 %v1006_v13 }
 0x906   :  { %v1516_v16 = vpop.eup %1515 }
 0x907   :  { %669 = vrot.lane.b32.xlu2 %v1516_v16, %s1576_s30  ;;  %v1518_v17 = vpop.eup %1517 }
 0x908   :  { %v621_v18 = vadd.f32 1.0, %v1518_v17  ;;  %v1007_v17 = vld [vmem:[%s2190_s4 + $0x8] sm:$0xff] }
 0x90a   :  { %1519 = vrcp.f32 %v621_v18  ;;  %v648_v28 = vand.u32 2147483648, %v621_v18  ;;  %vm642_vm14 = vweird.f32 %v621_v18  ;;  %v646_v29 = vand.u32 2147483647, %v621_v18 }
 0x90c   :  { %v649_v35 = vor.u32 1.1754944e-38, %v648_v28  ;;  %vm647_vm0 = vcmp.eq.f32.partialorder %v646_v29, 8.507059e+37 }
 0x910   :  { %v1520_v19 = vpop.eup %1519 }
 0x911   :  { %v638_v20 = vmul.f32 %v1520_v19, %v621_v18  ;;  %vm643_vm13 = vweird.f32 %v1520_v19 }
 0x912   :  { %vm644_vm15 = vmor %vm642_vm14, %vm643_vm13 }
 0x913   :  { %v639_v21 = vsub.f32 1.0, %v638_v20 }
 0x915   :  { %v640_v23 = vmul.f32 %v1520_v19, %v639_v21 }
 0x917   :  { %v641_v27 = vadd.f32 %v1520_v19, %v640_v23 }
 0x919   :  { %v645_v34 = vsel %vm644_vm15, %v1520_v19, %v641_v27 }
 0x91a   :  { %v650_v36 = vsel %vm647_vm0, %v649_v35, %v645_v34 }
 0x961   :  { %v670_v37 = vpop.permute.xlu2 %669 }
 0x962   :  { %v672_v38 = vmul.f32 %v670_v37, %v650_v36 }
 0x964   :  { %673 = vst.msk [vmem:[#allocation2 + $0x10] sm:$0xf] %vm237_vm9, %v672_v38  ;;  %1433 = vmatmul.msk.f32.vlgmr.msra.gmra.mxu2 %vm135_vm10, %v672_v38  ;;  %1434 = vmatmul.msk.f32.vlgmr.msra.gmra.mxu3 %vm135_vm10, %v672_v38  ;;  %v1002_v38 = vld [vmem:[#allocation2] sm:$0xff] }
 0x9e7   :  { %v714_v26 = vpop.f32.mrf.mxu3  ;;  %v694_v42 = vpop.f32.mrf.mxu2 }
 0x9e8   :  { %v720_v39 = vrot.slane %v714_v26, 4  ;;  %v719_v32 = vrot.slane %v694_v42, 4  ;;  %v1003_v26 = vld [vmem:[#allocation2 + $0x8] sm:$0xff] }
 0x9ea   :  { %v724_v40 = vadd.f32 %v720_v39, %v1940_v57  ;;  %v723_v43 = vadd.f32 %v719_v32, %v1946_v61  ;;  %v1021_v61 = vld [vmem:[%s2190_s4 + $0x78] sm:$0xff] }
 0x9eb   :  { %1077 = vmatpush.msra.mxu1 %v1021_v61 }
 0x9ec   :  { %1521 = vtanh.f32 %v724_v40  ;;  %v1435_v44 = vmul.f32 -1.442695, %v723_v43  ;;  %v1436_v8 = vmul.f32 -1.442695, %v724_v40  ;;  %v2025_v40 = vadd.f32 %v1889_v22, %v1807_v24 }
 0x9ed   :  { %1078 = vmatpush.msra.mxu1 %v1019_v63 }
 0x9ee   :  { %1523 = vpow2.f32 %v1435_v44  ;;  %v2031_v44 = vadd.f32 %v1898_v33, %v1814_v30 }
 0x9ef   :  { %1079 = vmatpush.msra.mxu1 %v1017_v1 }
 0x9f1   :  { %1080 = vmatpush.msra.mxu1 %v1015_v2 }
 0x9f2   :  { %v1522_v41 = vpop.eup %1521 }
 0x9f3   :  { %769 = vrot.lane.b32.xlu0 %v1522_v41, %s1576_s30  ;;  %1081 = vmatpush.msra.mxu1 %v1013_v7 }
 0x9f4   :  { %v1524_v45 = vpop.eup %1523 }
 0x9f5   :  { %v731_v46 = vadd.f32 1.0, %v1524_v45  ;;  %1082 = vmatpush.msra.mxu1 %v1011_v12 }
 0x9f7   :  { %1525 = vrcp.f32 %v731_v46  ;;  %v744_v54 = vand.u32 2147483648, %v731_v46  ;;  %vm738_vm2 = vweird.f32 %v731_v46  ;;  %v742_v55 = vand.u32 2147483647, %v731_v46  ;;  %1083 = vmatpush.msra.mxu1 %v1009_v11 }
 0x9f9   :  { %v745_v57 = vor.u32 1.1754944e-38, %v744_v54  ;;  %vm743_vm5 = vcmp.eq.f32.partialorder %v742_v55, 8.507059e+37  ;;  %1084 = vmatpush.msra.mxu1 %v1007_v17 }
 0x9fd   :  { %v1526_v47 = vpop.eup %1525 }
 0x9fe   :  { %v734_v48 = vmul.f32 %v1526_v47, %v731_v46  ;;  %vm739_vm1 = vweird.f32 %v1526_v47 }
 0x9ff   :  { %vm740_vm4 = vmor %vm738_vm2, %vm739_vm1 }
 0xa00   :  { %v735_v49 = vsub.f32 1.0, %v734_v48 }
 0xa02   :  { %v736_v52 = vmul.f32 %v1526_v47, %v735_v49 }
 0xa04   :  { %v737_v53 = vadd.f32 %v1526_v47, %v736_v52 }
 0xa06   :  { %v741_v56 = vsel %vm740_vm4, %v1526_v47, %v737_v53 }
 0xa07   :  { %v746_v59 = vsel %vm743_vm5, %v745_v57, %v741_v56 }
 0xa08   :  { %v767_v3 = vmul.f32 %v765_v50, %v746_v59 }
 0xa65   :  { %v770_v58 = vpop.permute.xlu0 %769 }
 0xa66   :  { %v772_v60 = vmul.f32 %v770_v58, %v746_v59 }
 0xa68   :  { %774 = vrot.lane.b32.xlu1 %v772_v60, %s1576_s30 }
 0xada   :  { %v775_v15 = vpop.permute.xlu1 %774 }
 0xadb   :  { %v1974_v4 = vadd.f32 %v775_v15, %v767_v3 }
 0xadd   :  { %1527 = vtanh.f32 %v1974_v4  ;;  %v871_v59 = vrot.slane %v1974_v4, 4 }
 0xade   :  { %1529 = vpow2.f32 %v1436_v8 }
 0xae3   :  { %v1528_v6 = vpop.eup %1527 }
 0xae4   :  { %780 = vrot.lane.b32.xlu2 %v1528_v6, %s1576_s30  ;;  %v1530_v9 = vpop.eup %1529 }
 0xae5   :  { %v732_v25 = vadd.f32 1.0, %v1530_v9 }
 0xae7   :  { %1531 = vrcp.f32 %v732_v25  ;;  %v759_v23 = vand.u32 2147483648, %v732_v25  ;;  %vm753_vm7 = vweird.f32 %v732_v25  ;;  %v757_v27 = vand.u32 2147483647, %v732_v25 }
 0xae9   :  { %v760_v29 = vor.u32 1.1754944e-38, %v759_v23  ;;  %vm758_vm11 = vcmp.eq.f32.partialorder %v757_v27, 8.507059e+37 }
 0xaed   :  { %v1532_v16 = vpop.eup %1531 }
 0xaee   :  { %v749_v18 = vmul.f32 %v1532_v16, %v732_v25  ;;  %vm754_vm6 = vweird.f32 %v1532_v16 }
 0xaef   :  { %vm755_vm8 = vmor %vm753_vm7, %vm754_vm6 }
 0xaf0   :  { %v750_v19 = vsub.f32 1.0, %v749_v18 }
 0xaf2   :  { %v751_v20 = vmul.f32 %v1532_v16, %v750_v19 }
 0xaf4   :  { %v752_v21 = vadd.f32 %v1532_v16, %v751_v20 }
 0xaf6   :  { %v756_v28 = vsel %vm755_vm8, %v1532_v16, %v752_v21 }
 0xaf7   :  { %v761_v34 = vsel %vm758_vm11, %v760_v29, %v756_v28 }
 0xb3e   :  { %v781_v35 = vpop.permute.xlu2 %780 }
 0xb3f   :  { %v783_v36 = vmul.f32 %v781_v35, %v761_v34 }
 0xb41   :  { %784 = vst.msk [vmem:[#allocation2 + $0x10] sm:$0xf0] %vm349_vm3, %v783_v36  ;;  %v786_v37 = vrot.slane %v783_v36, 4 }
 0xb43   :  { %1437 = vmatmul.msk.f32.vlgmr.msrb.gmra.mxu0 %vm135_vm10, %v786_v37  ;;  %1438 = vmatmul.msk.f32.vlgmr.msrb.gmra.mxu1 %vm135_vm10, %v786_v37 }
 0xb48   :  { %v1004_v39 = vld [vmem:[#allocation2 + $0x10] sm:$0xff] }
 0xb4b   :  { %1445 = vmatmul.msk.f32.vlgmr.msra.gmra.mxu0 %vm135_vm10, %v1002_v38  ;;  %1449 = vmatmul.msk.f32.vlgmr.msra.gmra.mxu1 %vm135_vm10, %v1002_v38 }
 0xb53   :  { %1446 = vmatmul.msk.f32.gmra.mxu0 %vm135_vm10, %v1003_v26  ;;  %1450 = vmatmul.msk.f32.gmra.mxu1 %vm135_vm10, %v1003_v26 }
 0xb5b   :  { %1447 = vmatmul.msk.f32.gmra.mxu0 %vm135_vm10, %v1004_v39  ;;  %1451 = vmatmul.msk.f32.gmra.mxu1 %vm135_vm10, %v1004_v39 }
 0xbc0   :  { %v826_v41 = vpop.f32.mrf.mxu1  ;;  %v806_v43 = vpop.f32.mrf.mxu0 }
 0xbc1   :  { %v830_v42 = vadd.f32 %v826_v41, %v2025_v40  ;;  %v829_v45 = vadd.f32 %v806_v43, %v2031_v44 }
 0xbc3   :  { %1533 = vtanh.f32 %v830_v42  ;;  %v1439_v46 = vmul.f32 -1.442695, %v829_v45  ;;  %v1440_v63 = vmul.f32 -1.442695, %v830_v42 }
 0xbc5   :  { %1535 = vpow2.f32 %v1439_v46 }
 0xbc9   :  { %v1534_v32 = vpop.eup %1533 }
 0xbca   :  { %875 = vrot.lane.b32.xlu0 %v1534_v32, %s1576_s30 }
 0xbcb   :  { %v1536_v47 = vpop.eup %1535 }
 0xbcc   :  { %v837_v48 = vadd.f32 1.0, %v1536_v47 }
 0xbce   :  { %1537 = vrcp.f32 %v837_v48  ;;  %v850_v54 = vand.u32 2147483648, %v837_v48  ;;  %vm844_vm13 = vweird.f32 %v837_v48  ;;  %v848_v55 = vand.u32 2147483647, %v837_v48 }
 0xbd0   :  { %v851_v30 = vor.u32 1.1754944e-38, %v850_v54  ;;  %vm849_vm15 = vcmp.eq.f32.partialorder %v848_v55, 8.507059e+37 }
 0xbd4   :  { %v1538_v24 = vpop.eup %1537 }
 0xbd5   :  { %v840_v22 = vmul.f32 %v1538_v24, %v837_v48  ;;  %vm845_vm12 = vweird.f32 %v1538_v24 }
 0xbd6   :  { %vm846_vm14 = vmor %vm844_vm13, %vm845_vm12 }
 0xbd7   :  { %v841_v49 = vsub.f32 1.0, %v840_v22 }
 0xbd9   :  { %v842_v52 = vmul.f32 %v1538_v24, %v841_v49 }
 0xbdb   :  { %v843_v53 = vadd.f32 %v1538_v24, %v842_v52 }
 0xbdd   :  { %v847_v56 = vsel %vm846_vm14, %v1538_v24, %v843_v53 }
 0xbde   :  { %v852_v57 = vsel %vm849_vm15, %v851_v30, %v847_v56 }
 0xbdf   :  { %v873_v60 = vmul.f32 %v871_v59, %v852_v57 }
 0xc3c   :  { %v876_v33 = vpop.permute.xlu0 %875 }
 0xc3d   :  { %v878_v58 = vmul.f32 %v876_v33, %v852_v57 }
 0xc3f   :  { %880 = vrot.lane.b32.xlu1 %v878_v58, %s1576_s30  ;;  %v1057_v58 = vpop.f32.mrf.mxu0 }
 0xc47   :  { %v1060_v59 = vpop.f32.mrf.mxu0 }
 0xcb1   :  { %v881_v51 = vpop.permute.xlu1 %880 }
 0xcb2   :  { %v883_v61 = vadd.f32 %v881_v51, %v873_v60  ;;  %v1063_v60 = vpop.f32.mrf.mxu0  ;;  %v2051_v51 = vld [vmem:[%s2191_s5] sm:$0x3] }
 0xcb4   :  { %1539 = vtanh.f32 %v883_v61 }
 0xcb5   :  { %1541 = vpow2.f32 %v1440_v63 }
 0xcba   :  { %v1540_v62 = vpop.eup %1539 }
 0xcbb   :  { %886 = vrot.lane.b32.xlu2 %v1540_v62, %s1576_s30  ;;  %v1542_v50 = vpop.eup %1541 }
 0xcbc   :  { %v838_v3 = vadd.f32 1.0, %v1542_v50 }
 0xcbe   :  { %1543 = vrcp.f32 %v838_v3  ;;  %v865_v0 = vand.u32 2147483648, %v838_v3  ;;  %vm859_vm1 = vweird.f32 %v838_v3  ;;  %v863_v4 = vand.u32 2147483647, %v838_v3 }
 0xcc0   :  { %v866_v31 = vor.u32 1.1754944e-38, %v865_v0  ;;  %vm864_vm4 = vcmp.eq.f32.partialorder %v863_v4, 8.507059e+37 }
 0xcc4   :  { %v1544_v15 = vpop.eup %1543 }
 0xcc5   :  { %v855_v6 = vmul.f32 %v1544_v15, %v838_v3  ;;  %vm860_vm0 = vweird.f32 %v1544_v15 }
 0xcc6   :  { %vm861_vm2 = vmor %vm859_vm1, %vm860_vm0 }
 0xcc7   :  { %v856_v8 = vsub.f32 1.0, %v855_v6 }
 0xcc9   :  { %v857_v9 = vmul.f32 %v1544_v15, %v856_v8 }
 0xccb   :  { %v858_v25 = vadd.f32 %v1544_v15, %v857_v9 }
 0xccd   :  { %v862_v1 = vsel %vm861_vm2, %v1544_v15, %v858_v25  ;;  %vm1401_vm2 = vcmask 3072  }
 0xcce   :  { %v867_v2 = vsel %vm864_vm4, %v866_v31, %v862_v1 }
 0xd15   :  { %v887_v5 = vpop.permute.xlu2 %886 }
 0xd16   :  { %v889_v7 = vmul.f32 %v887_v5, %v867_v2 }
 0xd18   :  { %890 = vst.msk [vmem:[#allocation2 + $0x18] sm:$0xf] %vm237_vm9, %v889_v7  ;;  %1441 = vmatmul.msk.f32.vlgmr.msrb.gmra.mxu2 %vm135_vm10, %v889_v7  ;;  %1442 = vmatmul.msk.f32.vlgmr.msrb.gmra.mxu3 %vm135_vm10, %v889_v7 }
 0xd9b   :  { %v931_v10 = vpop.f32.mrf.mxu3  ;;  %v911_v16 = vpop.f32.mrf.mxu2 }
 0xd9c   :  { %v937_v12 = vrot.slane %v931_v10, 4  ;;  %v936_v13 = vrot.slane %v911_v16, 4  ;;  %v1179_v16 = vld [vmem:[%s2192_s6 + $0x28] sm:$0xff] }
 0xd9e   :  { %v941_v14 = vadd.f32 %v937_v12, %v2025_v40  ;;  %v940_v17 = vadd.f32 %v936_v13, %v2031_v44  ;;  %v982_v40 = vrot.slane %v883_v61, 4  ;;  %v1024_v61 = vperm.slane %v2051_v51, 0 }
 0xda0   :  { %1545 = vtanh.f32 %v941_v14  ;;  %v1443_v18 = vmul.f32 -1.442695, %v940_v17  ;;  %v1444_v44 = vmul.f32 -1.442695, %v941_v14  ;;  %v1061_v4 = vadd.f32 %v1060_v59, %v1024_v61  ;;  %v1181_v14 = vld [vmem:[%s2192_s6 + $0x38] sm:$0xff] }
 0xda1   :  { %v1064_v2 = vadd.f32 %v1063_v60, %v1024_v61  ;;  %v1058_v12 = vadd.f32 %v1057_v58, %v1024_v61  ;;  %1233 = vmatpush.msra.mxu2 %v1181_v14 }
 0xda2   :  { %1547 = vpow2.f32 %v1443_v18  ;;  %v1178_v18 = vld [vmem:[%s2192_s6 + $0x20] sm:$0xff] }
 0xda3   :  { %v1104_v5 = vrot.slane %v1064_v2, 4  ;;  %v1102_v13 = vrot.slane %v1058_v12, 4 }
 0xda6   :  { %v1546_v11 = vpop.eup %1545 }
 0xda7   :  { %986 = vrot.lane.b32.xlu0 %v1546_v11, %s1576_s30  ;;  %v1180_v11 = vld [vmem:[%s2192_s6 + $0x30] sm:$0xff] }
 0xda8   :  { %v1548_v19 = vpop.eup %1547  ;;  %1234 = vmatpush.msra.mxu2 %v1180_v11 }
 0xda9   :  { %v948_v20 = vadd.f32 1.0, %v1548_v19 }
 0xdaa   :  { %1235 = vmatpush.msra.mxu2 %v1179_v16 }
 0xdab   :  { %1549 = vrcp.f32 %v948_v20  ;;  %v961_v34 = vand.u32 2147483648, %v948_v20  ;;  %vm955_vm6 = vweird.f32 %v948_v20  ;;  %v959_v35 = vand.u32 2147483647, %v948_v20 }
 0xdac   :  { %1236 = vmatpush.msra.mxu2 %v1178_v18 }
 0xdad   :  { %v962_v37 = vor.u32 1.1754944e-38, %v961_v34  ;;  %vm960_vm8 = vcmp.eq.f32.partialorder %v959_v35, 8.507059e+37  ;;  %v1174_v35 = vld [vmem:[%s2192_s6] sm:$0xff] }
 0xdb1   :  { %v1550_v21 = vpop.eup %1549 }
 0xdb2   :  { %v951_v23 = vmul.f32 %v1550_v21, %v948_v20  ;;  %vm956_vm5 = vweird.f32 %v1550_v21 }
 0xdb3   :  { %vm957_vm7 = vmor %vm955_vm6, %vm956_vm5 }
 0xdb4   :  { %v952_v27 = vsub.f32 1.0, %v951_v23  ;;  %v1177_v23 = vld [vmem:[%s2192_s6 + $0x18] sm:$0xff] }
 0xdb5   :  { %1237 = vmatpush.msra.mxu2 %v1177_v23 }
 0xdb6   :  { %v953_v28 = vmul.f32 %v1550_v21, %v952_v27  ;;  %v1176_v27 = vld [vmem:[%s2192_s6 + $0x10] sm:$0xff] }
 0xdb7   :  { %1238 = vmatpush.msra.mxu2 %v1176_v27 }
 0xdb8   :  { %v954_v29 = vadd.f32 %v1550_v21, %v953_v28  ;;  %v1175_v28 = vld [vmem:[%s2192_s6 + $0x8] sm:$0xff] }
 0xdb9   :  { %1239 = vmatpush.msra.mxu2 %v1175_v28 }
 0xdba   :  { %v958_v36 = vsel %vm957_vm7, %v1550_v21, %v954_v29  ;;  %v1103_v29 = vrot.slane %v1061_v4, 4 }
 0xdbb   :  { %v963_v26 = vsel %vm960_vm8, %v962_v37, %v958_v36  ;;  %1240 = vmatpush.msra.mxu2 %v1174_v35 }
 0xdbc   :  { %v984_v41 = vmul.f32 %v982_v40, %v963_v26 }
 0xe19   :  { %v987_v38 = vpop.permute.xlu0 %986 }
 0xe1a   :  { %v989_v39 = vmul.f32 %v987_v38, %v963_v26 }
 0xe1c   :  { %991 = vrot.lane.b32.xlu1 %v989_v39, %s1576_s30 }
 0xe8e   :  { %v992_v42 = vpop.permute.xlu1 %991 }
 0xe8f   :  { %v994_v32 = vadd.f32 %v992_v42, %v984_v41 }
 0xe91   :  { %1551 = vtanh.f32 %v994_v32 }
 0xe92   :  { %1553 = vpow2.f32 %v1444_v44 }
 0xe97   :  { %v1552_v43 = vpop.eup %1551 }
 0xe98   :  { %997 = vrot.lane.b32.xlu2 %v1552_v43, %s1576_s30  ;;  %v1554_v45 = vpop.eup %1553 }
 0xe99   :  { %v949_v46 = vadd.f32 1.0, %v1554_v45 }
 0xe9b   :  { %1555 = vrcp.f32 %v949_v46  ;;  %v976_v52 = vand.u32 2147483648, %v949_v46  ;;  %vm970_vm12 = vweird.f32 %v949_v46  ;;  %v974_v53 = vand.u32 2147483647, %v949_v46 }
 0xe9d   :  { %v977_v55 = vor.u32 1.1754944e-38, %v976_v52  ;;  %vm975_vm14 = vcmp.eq.f32.partialorder %v974_v53, 8.507059e+37 }
 0xea1   :  { %v1556_v47 = vpop.eup %1555 }
 0xea2   :  { %v966_v48 = vmul.f32 %v1556_v47, %v949_v46  ;;  %vm971_vm11 = vweird.f32 %v1556_v47 }
 0xea3   :  { %vm972_vm13 = vmor %vm970_vm12, %vm971_vm11 }
 0xea4   :  { %v967_v24 = vsub.f32 1.0, %v966_v48 }
 0xea6   :  { %v968_v22 = vmul.f32 %v1556_v47, %v967_v24 }
 0xea8   :  { %v969_v49 = vadd.f32 %v1556_v47, %v968_v22 }
 0xeaa   :  { %v973_v54 = vsel %vm972_vm13, %v1556_v47, %v969_v49 }
 0xeab   :  { %v978_v56 = vsel %vm975_vm14, %v977_v55, %v973_v54 }
 0xef2   :  { %v998_v30 = vpop.permute.xlu2 %997 }
 0xef3   :  { %v1000_v33 = vmul.f32 %v998_v30, %v978_v56 }
 0xef5   :  { %1001 = vst.msk [vmem:[#allocation2 + $0x18] sm:$0xf0] %vm349_vm3, %v1000_v33 }
 0xefc   :  { %v1005_v57 = vld [vmem:[#allocation2 + $0x18] sm:$0xff] }
 0xefd   :  { %1448 = vmatmul.msk.f32.gmra.mxu0 %vm135_vm10, %v1005_v57  ;;  %1452 = vmatmul.msk.f32.gmra.mxu1 %vm135_vm10, %v1005_v57 }
 0xf7a   :  { %v1066_v62 = vpop.f32.mrf.mxu0 }
 0xf7b   :  { %v2054_v63 = vadd.f32 %v1066_v62, %v1024_v61 }
 0xf7d   :  { %1122 = vst.sshfl [vmem:[#allocation1] sm:$0xff pattern:$0x75316420] %v2054_v63  ;;  %v1105_v40 = vrot.slane %v2054_v63, 4 }
 0xf7e   :  { %1125 = vst.sshfl [vmem:[#allocation1 + $0x10] sm:$0xff pattern:$0x75316420] %v2054_v63 }
 0xf7f   :  { %1128 = vst.sshfl [vmem:[#allocation1 + $0x20] sm:$0xff pattern:$0x75316420] %v2054_v63 }
 0xf80   :  { %1131 = vst.sshfl [vmem:[#allocation1 + $0x30] sm:$0xff pattern:$0x75316420] %v2054_v63 }
 0xf84   :  { %v1124_v50 = vld [vmem:[#allocation1 + $0x1] ss:$2 sm:$0xff] }
 0xf85   :  { %v1127_v3 = vld [vmem:[#allocation1 + $0x11] ss:$2 sm:$0xff]  ;;  %1142 = vrot.lane.b32.xlu0 %v1124_v50, %s1576_s30  ;;  %1134 = vst.sshfl [vmem:[#allocation1] sm:$0xff pattern:$0x75316420] %v2054_v63 }
 0xf86   :  { %v1130_v15 = vld [vmem:[#allocation1 + $0x21] ss:$2 sm:$0xff]  ;;  %1144 = vrot.lane.b32.xlu1 %v1127_v3, %s1576_s30  ;;  %1136 = vst.sshfl [vmem:[#allocation1 + $0x10] sm:$0xff pattern:$0x75316420] %v2054_v63 }
 0xf87   :  { %1146 = vrot.lane.b32.xlu2 %v1130_v15, %s1576_s30  ;;  %1138 = vst.sshfl [vmem:[#allocation1 + $0x20] sm:$0xff pattern:$0x75316420] %v2054_v63  ;;  %v1133_v6 = vld [vmem:[#allocation1 + $0x31] ss:$2 sm:$0xff] }
 0xf88   :  { %1140 = vst.sshfl [vmem:[#allocation1 + $0x30] sm:$0xff pattern:$0x75316420] %v2054_v63 }
 0xf8c   :  { %v1135_v8 = vld [vmem:[#allocation1 + $0x1] ss:$2 sm:$0xff] }
 0xf8d   :  { %v1137_v9 = vld [vmem:[#allocation1 + $0x11] ss:$2 sm:$0xff]  ;;  %1148 = vrot.lane.b32.xlu0 %v1133_v6, %s1576_s30 }
 0xf8e   :  { %1150 = vrot.lane.b32.xlu1 %v1135_v8, %s1576_s30  ;;  %v1139_v25 = vld [vmem:[#allocation1 + $0x21] ss:$2 sm:$0xff] }
 0xf8f   :  { %1152 = vrot.lane.b32.xlu2 %v1137_v9, %s1576_s30  ;;  %v1141_v0 = vld [vmem:[#allocation1 + $0x31] ss:$2 sm:$0xff] }
 0xf95   :  { %1154 = vrot.lane.b32.xlu0 %v1139_v25, %s1576_s30 }
 0xf96   :  { %1156 = vrot.lane.b32.xlu1 %v1141_v0, %s1576_s30 }
 0xfe1   :  { %v1147_v1 = vpop.permute.xlu2 %1146 }
 0xfe2   :  { %v1168_v31 = vmul.f32 %v1147_v1, %v1061_v4 }
 0xfe4   :  { %1194 = vst [vmem:[#allocation1 + $0x10] ss:$2 sm:$0xff] %v1168_v31 }
 0xfe9   :  { %v1153_v7 = vpop.permute.xlu2 %1152 }
 0xfea   :  { %v1171_v10 = vmul.f32 %v1153_v7, %v1104_v5 }
 0xfec   :  { %1200 = vst [vmem:[#allocation1 + $0x21] ss:$2 sm:$0xff] %v1171_v10 }
 0xff7   :  { %v1143_v17 = vpop.permute.xlu0 %1142 }
 0xff8   :  { %v1145_v19 = vpop.permute.xlu1 %1144  ;;  %v1166_v20 = vmul.f32 %v1143_v17, %v1058_v12 }
 0xff9   :  { %v1167_v21 = vmul.f32 %v1145_v19, %v1102_v13 }
 0xffa   :  { %1190 = vst [vmem:[#allocation1] ss:$2 sm:$0xff] %v1166_v20 }
 0xffb   :  { %1192 = vst [vmem:[#allocation1 + $0x1] ss:$2 sm:$0xff] %v1167_v21 }
 0xfff   :  { %v1149_v34 = vpop.permute.xlu0 %1148 }
0x1000   :  { %v1169_v36 = vmul.f32 %v1149_v34, %v1103_v29  ;;  %v1151_v37 = vpop.permute.xlu1 %1150 }
0x1001   :  { %v1170_v38 = vmul.f32 %v1151_v37, %v1064_v2 }
0x1002   :  { %1196 = vst [vmem:[#allocation1 + $0x11] ss:$2 sm:$0xff] %v1169_v36  ;;  %v1205_v26 = vld.sshfl [vmem:[#allocation1] sm:$0xff pattern:$0x75316420] }
0x1003   :  { %1198 = vst [vmem:[#allocation1 + $0x20] ss:$2 sm:$0xff] %v1170_v38  ;;  %1209 = vrot.lane.b32.xlu2 %v1205_v26, %s1576_s30  ;;  %v1372_v26 = vld [vmem:[%s2193_s7 + $0x38] sm:$0xff] }
0x1004   :  { %1388 = vmatpush.msra.mxu3 %v1372_v26 }
0x1007   :  { %v1155_v39 = vpop.permute.xlu0 %1154 }
0x1008   :  { %v1172_v41 = vmul.f32 %v1155_v39, %v2054_v63  ;;  %v1157_v42 = vpop.permute.xlu1 %1156  ;;  %v1371_v39 = vld [vmem:[%s2193_s7 + $0x30] sm:$0xff] }
0x1009   :  { %v1173_v32 = vmul.f32 %v1157_v42, %v1105_v40  ;;  %v1206_v43 = vld.sshfl [vmem:[#allocation1 + $0x10] sm:$0xff pattern:$0x75316420]  ;;  %1389 = vmatpush.msra.mxu3 %v1371_v39 }
0x100a   :  { %1202 = vst [vmem:[#allocation1 + $0x30] ss:$2 sm:$0xff] %v1172_v41  ;;  %v1207_v44 = vld.sshfl [vmem:[#allocation1 + $0x20] sm:$0xff pattern:$0x75316420]  ;;  %1211 = vrot.lane.b32.xlu0 %v1206_v43, %s1576_s30 }
0x100b   :  { %1204 = vst [vmem:[#allocation1 + $0x31] ss:$2 sm:$0xff] %v1173_v32  ;;  %1213 = vrot.lane.b32.xlu1 %v1207_v44, %s1576_s30  ;;  %v1370_v32 = vld [vmem:[%s2193_s7 + $0x28] sm:$0xff]  ;;  %v1086_v44 = vpop.f32.mrf.mxu1 }
0x100c   :  { %1390 = vmatpush.msra.mxu3 %v1370_v32 }
0x1012   :  { %v1208_v45 = vld.sshfl [vmem:[#allocation1 + $0x30] sm:$0xff pattern:$0x75316420] }
0x1013   :  { %1215 = vrot.lane.b32.xlu2 %v1208_v45, %s1576_s30 }
0x105d   :  { %v1210_v46 = vpop.permute.xlu2 %1209 }
0x105e   :  { %1453 = vmatmul.msk.f32.vlgmr.msra.gmra.mxu2 %vm135_vm10, %v1210_v46 }
0x106d   :  { %v1216_v24 = vpop.permute.xlu2 %1215 }
0x107c   :  { %v1212_v47 = vpop.permute.xlu0 %1211 }
0x107d   :  { %1454 = vmatmul.msk.f32.gmra.mxu2 %vm135_vm10, %v1212_v47  ;;  %v1214_v48 = vpop.permute.xlu1 %1213  ;;  %v1369_v47 = vld [vmem:[%s2193_s7 + $0x20] sm:$0xff] }
0x107e   :  { %1391 = vmatpush.msra.mxu3 %v1369_v47 }
0x1085   :  { %1455 = vmatmul.msk.f32.gmra.mxu2 %vm135_vm10, %v1214_v48 }
0x108d   :  { %1456 = vmatmul.msk.f32.gmra.mxu2 %vm135_vm10, %v1216_v24 }
0x10e1   :  { %v1242_v22 = vpop.f32.mrf.mxu2 }
0x10e2   :  { %v1258_v54 = vrot.slane %v1242_v22, 4  ;;  %v1266_v61 = vsel %vm237_vm9, %v1242_v22, -inf }
0x10e4   :  { %v1267_v33 = vsel %vm237_vm9, %v1258_v54, -inf }
0x1100   :  { %v1245_v49 = vpop.f32.mrf.mxu2 }
0x1101   :  { %v1259_v55 = vrot.slane %v1245_v49, 4  ;;  %v1268_v62 = vsel %vm237_vm9, %v1245_v49, -inf }
0x1103   :  { %v1269_v63 = vsel %vm237_vm9, %v1259_v55, -inf }
0x1108   :  { %v1248_v52 = vpop.f32.mrf.mxu2 }
0x1109   :  { %v1260_v53 = vrot.slane %v1248_v52, 4  ;;  %v1270_v57 = vsel %vm237_vm9, %v1248_v52, -inf }
0x110a   :  { %v1271_v3 = vmax.f32 %v1266_v61, %v1270_v57  ;;  %v14_v57 = vstv %s2194_s8 }
0x110b   :  { %v1272_v56 = vsel %vm237_vm9, %v1260_v53, -inf  ;;  %15 = vst [vmem:[#allocation3] sm:$0x1] %v14_v57 }
0x110c   :  { %v1273_v60 = vmax.f32 %v1267_v33, %v1272_v56  ;;  %v1366_v56 = vld [vmem:[%s2193_s7 + $0x8] sm:$0xff]  ;;  %v1089_v33 = vpop.f32.mrf.mxu1 }
0x110e   :  { %v1278_v8 = vmax.f32 %v1271_v3, %v1273_v60  ;;  %v1025_v60 = vperm.slane %v2051_v51, 1 }
0x1110   :  { %v1251_v30 = vpop.f32.mrf.mxu2 }
0x1111   :  { %v1261_v58 = vrot.slane %v1251_v30, 4  ;;  %v1274_v59 = vsel %vm237_vm9, %v1251_v30, -inf }
0x1112   :  { %v1275_v15 = vmax.f32 %v1268_v62, %v1274_v59 }
0x1113   :  { %v1276_v50 = vsel %vm237_vm9, %v1261_v58, -inf }
0x1114   :  { %v1277_v6 = vmax.f32 %v1269_v63, %v1276_v50  ;;  %v1092_v3 = vpop.f32.mrf.mxu1 }
0x1116   :  { %v1279_v9 = vmax.f32 %v1275_v15, %v1277_v6  ;;  %v1087_v15 = vadd.f32 %v1086_v44, %v1025_v60 }
0x1118   :  { %v1280_v25 = vmax.f32 %v1278_v8, %v1279_v9  ;;  %v1090_v9 = vadd.f32 %v1089_v33, %v1025_v60 }
0x111a   :  { %v1281_v0 = vsub.f32 %v1242_v22, %v1280_v25  ;;  %v1282_v4 = vsub.f32 %v1258_v54, %v1280_v25  ;;  %v1283_v1 = vsub.f32 %v1245_v49, %v1280_v25  ;;  %v1284_v31 = vsub.f32 %v1259_v55, %v1280_v25  ;;  %v1368_v49 = vld [vmem:[%s2193_s7 + $0x18] sm:$0xff]  ;;  %v1367_v54 = vld [vmem:[%s2193_s7 + $0x10] sm:$0xff] }
0x111b   :  { %v1285_v2 = vsub.f32 %v1248_v52, %v1280_v25  ;;  %v1286_v12 = vsub.f32 %v1260_v53, %v1280_v25  ;;  %v1287_v11 = vsub.f32 %v1251_v30, %v1280_v25  ;;  %v1288_v13 = vsub.f32 %v1261_v58, %v1280_v25  ;;  %1392 = vmatpush.msra.mxu3 %v1368_v49  ;;  %v1365_v30 = vld [vmem:[%s2193_s7] sm:$0xff] }
0x111c   :  { %v1289_v5 = vmul.f32 1.442695, %v1281_v0  ;;  %v1291_v7 = vmul.f32 1.442695, %v1282_v4  ;;  %v1293_v10 = vmul.f32 1.442695, %v1283_v1 }
0x111d   :  { %v1295_v14 = vmul.f32 1.442695, %v1284_v31  ;;  %v1297_v16 = vmul.f32 1.442695, %v1285_v2  ;;  %v1299_v17 = vmul.f32 1.442695, %v1286_v12  ;;  %1393 = vmatpush.msra.mxu3 %v1367_v54  ;;  %v1093_v31 = vadd.f32 %v1092_v3, %v1025_v60 }
0x111e   :  { %1557 = vpow2.f32 %v1289_v5  ;;  %v1301_v18 = vmul.f32 1.442695, %v1287_v11  ;;  %v1303_v21 = vmul.f32 1.442695, %v1288_v13  ;;  %v1114_v4 = vrot.slane %v1087_v15, 4  ;;  %v1095_v11 = vpop.f32.mrf.mxu1 }
0x111f   :  { %1559 = vpow2.f32 %v1291_v7  ;;  %1394 = vmatpush.msra.mxu3 %v1366_v56  ;;  %v1115_v7 = vrot.slane %v1090_v9, 4 }
0x1120   :  { %1561 = vpow2.f32 %v1293_v10 }
0x1121   :  { %1563 = vpow2.f32 %v1295_v14  ;;  %1395 = vmatpush.msra.mxu3 %v1365_v30 }
0x1122   :  { %1565 = vpow2.f32 %v1297_v16 }
0x1123   :  { %1567 = vpow2.f32 %v1299_v17 }
0x1124   :  { %v2114_v19 = vpop.eup %1557  ;;  %1569 = vpow2.f32 %v1301_v18 }
0x1125   :  { %v2116_v20 = vpop.eup %1559  ;;  %v1305_v23 = vsel %vm237_vm9, %v2114_v19, 0.0  ;;  %1571 = vpow2.f32 %v1303_v21  ;;  %v1116_v21 = vrot.slane %v1093_v31, 4 }
0x1126   :  { %v2120_v27 = vpop.eup %1561  ;;  %v1306_v28 = vsel %vm237_vm9, %v2116_v20, 0.0 }
0x1127   :  { %v2124_v29 = vpop.eup %1563  ;;  %v1307_v34 = vadd.f32 %v1306_v28, %v1305_v23  ;;  %v1308_v35 = vsel %vm237_vm9, %v2120_v27, 0.0  ;;  %v1096_v23 = vadd.f32 %v1095_v11, %v1025_v60 }
0x1128   :  { %v2128_v36 = vpop.eup %1565  ;;  %v1310_v38 = vsel %vm237_vm9, %v2124_v29, 0.0 }
0x1129   :  { %v1309_v37 = vadd.f32 %v1308_v35, %v1307_v34  ;;  %v1568_v40 = vpop.eup %1567  ;;  %v1312_v42 = vsel %vm237_vm9, %v2128_v36, 0.0  ;;  %v1117_v26 = vrot.slane %v1096_v23, 4 }
0x112a   :  { %v2143_v43 = vpop.eup %1569  ;;  %v1314_v46 = vsel %vm237_vm9, %v1568_v40, 0.0 }
0x112b   :  { %v1311_v41 = vadd.f32 %v1310_v38, %v1309_v37  ;;  %v1572_v48 = vpop.eup %1571  ;;  %v1316_v22 = vsel %vm237_vm9, %v2143_v43, 0.0 }
0x112c   :  { %v1318_v53 = vsel %vm237_vm9, %v1572_v48, 0.0 }
0x112d   :  { %v1313_v45 = vadd.f32 %v1312_v42, %v1311_v41 }
0x112f   :  { %v1315_v24 = vadd.f32 %v1314_v46, %v1313_v45 }
0x1131   :  { %v1317_v52 = vadd.f32 %v1316_v22, %v1315_v24 }
0x1133   :  { %v1319_v55 = vadd.f32 %v1318_v53, %v1317_v52 }
0x1135   :  { %1573 = vrcp.f32 %v1319_v55  ;;  %v1331_v62 = vand.u32 2147483648, %v1319_v55  ;;  %v1329_v50 = vand.u32 2147483647, %v1319_v55  ;;  %vm1325_vm15 = vweird.f32 %v1319_v55 }
0x1137   :  { %v1332_v8 = vor.u32 1.1754944e-38, %v1331_v62  ;;  %vm1330_vm1 = vcmp.eq.f32.partialorder %v1329_v50, 8.507059e+37 }
0x113b   :  { %v1574_v58 = vpop.eup %1573 }
0x113c   :  { %v1321_v59 = vmul.f32 %v1574_v58, %v1319_v55  ;;  %vm1326_vm3 = vweird.f32 %v1574_v58 }
0x113d   :  { %vm1327_vm0 = vmor %vm1325_vm15, %vm1326_vm3 }
0x113e   :  { %v1322_v61 = vsub.f32 1.0, %v1321_v59 }
0x1140   :  { %v1323_v63 = vmul.f32 %v1574_v58, %v1322_v61 }
0x1142   :  { %v1324_v6 = vadd.f32 %v1574_v58, %v1323_v63 }
0x1144   :  { %v1328_v25 = vsel %vm1327_vm0, %v1574_v58, %v1324_v6 }
0x1145   :  { %v1333_v0 = vsel %vm1330_vm1, %v1332_v8, %v1328_v25 }
0x1146   :  { %v1334_v1 = vmul.f32 %v2114_v19, %v1333_v0  ;;  %v1335_v51 = vmul.f32 %v2116_v20, %v1333_v0  ;;  %v1336_v2 = vmul.f32 %v2120_v27, %v1333_v0  ;;  %v1337_v5 = vmul.f32 %v2124_v29, %v1333_v0 }
0x1147   :  { %v1338_v10 = vmul.f32 %v2128_v36, %v1333_v0  ;;  %v1339_v13 = vmul.f32 %v1568_v40, %v1333_v0  ;;  %v1340_v27 = vmul.f32 %v2143_v43, %v1333_v0  ;;  %v1341_v35 = vmul.f32 %v1572_v48, %v1333_v0  ;;  %v1460_v48 = vld [vmem:[#allocation3] ss:$0 sm:$0xff] }
0x1148   :  { %v1342_v12 = vmul.f32 %v1334_v1, %v1087_v15  ;;  %v1343_v14 = vmul.f32 %v1335_v51, %v1114_v4  ;;  %v1344_v16 = vmul.f32 %v1336_v2, %v1090_v9  ;;  %v1345_v17 = vmul.f32 %v1337_v5, %v1115_v7 }
0x1149   :  { %v1346_v28 = vmul.f32 %v1338_v10, %v1093_v31  ;;  %v1347_v36 = vmul.f32 %v1339_v13, %v1116_v21  ;;  %v1348_v39 = vmul.f32 %v1340_v27, %v1096_v23  ;;  %v1349_v42 = vmul.f32 %v1341_v35, %v1117_v26 }
0x114a   :  { %v1350_v18 = vsel %vm237_vm9, %v1342_v12, 0.0  ;;  %v1351_v19 = vsel %vm237_vm9, %v1343_v14, 0.0  ;;  %v1353_v29 = vsel %vm237_vm9, %v1344_v16, 0.0  ;;  %v1355_v37 = vsel %vm237_vm9, %v1345_v17, 0.0 }
0x114b   :  { %v1352_v20 = vadd.f32 %v1351_v19, %v1350_v18  ;;  %v1357_v40 = vsel %vm237_vm9, %v1346_v28, 0.0  ;;  %v1359_v32 = vsel %vm237_vm9, %v1347_v36, 0.0  ;;  %v1361_v43 = vsel %vm237_vm9, %v1348_v39, 0.0 }
0x114c   :  { %v1363_v46 = vsel %vm237_vm9, %v1349_v42, 0.0 }
0x114d   :  { %v1354_v34 = vadd.f32 %v1353_v29, %v1352_v20 }
0x114f   :  { %v1356_v38 = vadd.f32 %v1355_v37, %v1354_v34 }
0x1151   :  { %v1358_v41 = vadd.f32 %v1357_v40, %v1356_v38 }
0x1153   :  { %v1360_v44 = vadd.f32 %v1359_v32, %v1358_v41 }
0x1155   :  { %v1362_v45 = vadd.f32 %v1361_v43, %v1360_v44 }
0x1157   :  { %v1364_v47 = vadd.f32 %v1363_v46, %v1362_v45 }
0x1159   :  { %1457 = vmatmul.msk.f32.vlgmr.msra.gmra.mxu3 %vm135_vm10, %v1364_v47 }
0x11dc   :  { %v1397_v24 = vpop.f32.mrf.mxu3 }
0x11dd   :  { %v1398_v22 = vadd.f32 %v1460_v48, %v1397_v24 }
0x11df   :  { %v1400_v49 = vand.u32 2147483647, %v1398_v22 }
0x11e1   :  { %1402 = vst.msk [vmem:[%s2195_s9] sm:$0xf] %vm1401_vm2, %v1400_v49 }

</bundles_post_ra>
